<compile_context>
chip_gen: v7x
topology: tpu7x:2x2x1
jax: 0.10.0
libtpu: 0.0.40
codegen_flags: <defaults>
</compile_context>

<pallas_src>
import functools

import jax
import jax.numpy as jnp
from jax import lax
from jax.experimental import pallas as pl
from jax.experimental.pallas import tpu as pltpu


def _round_up(x, m):
    return ((x + m - 1) // m) * m


# ---------------------------------------------------------------------------
# Kernel 1: conv as K*K-tap accumulation over a Cin-tile reduction grid axis.
# Optionally fuses ReLU (no-BN case) and the BN sum / sum-of-squares reduction.
# ---------------------------------------------------------------------------
def _conv_kernel(*refs, ksize, stride, Wp, Mrow, use_bn, fuse_relu):
    if use_bn:
        x_ref, w_ref, b_ref, mask_ref, y_ref, stats_ref, acc_ref = refs
    else:
        x_ref, w_ref, b_ref, y_ref, acc_ref = refs

    n = pl.program_id(1)    # image index (stats accumulate across it)
    ci = pl.program_id(2)   # Cin tile -> reduction axis

    @pl.when(ci == 0)
    def _():
        acc_ref[...] = jnp.zeros_like(acc_ref)

    acc = acc_ref[...]
    for kh in range(ksize):
        for kw in range(ksize):
            off = kh * Wp + kw
            if stride == 1:
                xs = x_ref[0, pl.ds(off, Mrow), :]            # (Mrow, ci_t) bf16
            else:
                xs = x_ref[0, pl.ds(off, Mrow, stride), :]
            acc = acc + jnp.dot(xs, w_ref[kh * ksize + kw],
                                preferred_element_type=jnp.float32)
    acc_ref[...] = acc

    @pl.when(ci == pl.num_programs(2) - 1)
    def _():
        y = acc_ref[...] + b_ref[...]          # bias added once, at finalize
        if fuse_relu:
            y = jnp.maximum(y, 0.0)
        y_ref[0] = y.astype(y_ref.dtype)
        if use_bn:
            # Per-channel batch statistics; mask removes garbage (wo >= Wo)
            # columns of the flat-spatial layout. stats output block is
            # resident across the (arbitrary) batch axis -> accumulator.
            ym = y * mask_ref[...]
            part = jnp.concatenate(
                [jnp.sum(ym, axis=0, keepdims=True),
                 jnp.sum(ym * ym, axis=0, keepdims=True)], axis=0)  # (2, co_t)
            stats_ref[...] = jnp.where(n == 0, part, stats_ref[...] + part)


# ---------------------------------------------------------------------------
# Kernel 2: tiled normalize (+ optional ReLU): y * scale + shift per channel.
# ---------------------------------------------------------------------------
def _bn_norm_kernel(y_ref, scale_ref, shift_ref, o_ref, *, apply_relu):
    out = y_ref[0] * scale_ref[...] + shift_ref[...]
    if apply_relu:
        out = jnp.maximum(out, 0.0)
    o_ref[0] = out.astype(o_ref.dtype)


# ---------------------------------------------------------------------------
# Wrapper
# ---------------------------------------------------------------------------
def base_conv_forward(x_nchw, weight_oihw, bias, bn_gamma, bn_beta, *,
                      stride=1, use_bn=False, activation=None, bn_eps=1e-5):
    """Forward pass of BaseConv. activation in {None, 'relu'}."""
    N, Cin, H, W = x_nchw.shape
    Cout, Cin_w, K, K2 = weight_oihw.shape
    assert Cin_w == Cin and K == K2
    pad = K // 2
    s = stride
    Ho = (H + 2 * pad - K) // s + 1
    Wo = (W + 2 * pad - K) // s + 1
    Wp = W + 2 * pad
    Mrow = Ho * Wp                                    # flat rows per image
    # flat length so every (kh, kw) tap is one contiguous/strided window
    Lneed = s * (Mrow - 1) + (K - 1) * Wp + (K - 1) + 1
    Hp = max(H + 2 * pad, -(-Lneed // Wp))            # ceil division
    L = Hp * Wp

    compute_dtype = jnp.bfloat16

    # NCHW -> NHWC, pad, flatten spatial, cast to bf16 for the MXU.
    x_nhwc = jnp.transpose(x_nchw, (0, 2, 3, 1))
    xp = jnp.pad(x_nhwc, ((0, 0), (pad, Hp - H - pad), (pad, pad), (0, 0)))
    x2 = xp.reshape(N, L, Cin).astype(compute_dtype)

    # Channel tiling (BlockSpec last-dim must be 128-multiple or the full dim).
    if Cin % 256 == 0 and Cin > 256:
        ci_t = 256
    elif Cin % 128 == 0 and Cin > 128:
        ci_t = 128
    else:
        ci_t = Cin
    n_ci = Cin // ci_t

    Co_pad = _round_up(Cout, 128)                     # lane-dense output
    co_t = 256 if (Co_pad % 256 == 0) else 128
    n_co = Co_pad // co_t

    # Weights OIHW -> (K*K, Cin, Co_pad) bf16 ; bias -> (1, Co_pad) f32
    w = jnp.transpose(weight_oihw, (2, 3, 1, 0)).reshape(K * K, Cin, Cout)
    w = jnp.pad(w, ((0, 0), (0, 0), (0, Co_pad - Cout))).astype(compute_dtype)
    b2 = jnp.pad(bias.astype(jnp.float32), (0, Co_pad - Cout)).reshape(1, Co_pad)

    fuse_relu = (activation == 'relu') and (not use_bn)

    grid = (n_co, N, n_ci)
    in_specs = [
        pl.BlockSpec((1, L, ci_t), lambda j, n, c: (n, 0, c)),
        pl.BlockSpec((K * K, ci_t, co_t), lambda j, n, c: (0, c, j)),
        pl.BlockSpec((1, co_t), lambda j, n, c: (0, j)),
    ]
    inputs = [x2, w, b2]
    out_shape = jax.ShapeDtypeStruct((N, Mrow, Co_pad), jnp.float32)
    out_specs = pl.BlockSpec((1, Mrow, co_t), lambda j, n, c: (n, 0, j))
    scratch = [pltpu.VMEM((Mrow, co_t), jnp.float32)]   # f32 accumulator

    if use_bn:
        mask = ((jnp.arange(Mrow) % Wp) < Wo).astype(jnp.float32).reshape(Mrow, 1)
        in_specs.append(pl.BlockSpec((Mrow, 1), lambda j, n, c: (0, 0)))
        inputs.append(mask)
        out_shape = (out_shape, jax.ShapeDtypeStruct((2, Co_pad), jnp.float32))
        out_specs = (out_specs, pl.BlockSpec((2, co_t), lambda j, n, c: (0, j)))
        # stats output is revisited across the batch axis -> mark it arbitrary
        sem = ("parallel", "arbitrary", "arbitrary")
    else:
        sem = ("parallel", "parallel", "arbitrary")

    # Explicit VMEM budget: double-buffered x/w/y blocks + accumulator + extras.
    blk_bytes = (2 * L * ci_t * 2 + 2 * K * K * ci_t * co_t * 2
                 + 2 * Mrow * co_t * 4 + Mrow * co_t * 4
                 + 6 * co_t * 4 + Mrow * 4 + (2 << 20))
    vmem_limit = int(min(max(blk_bytes, 32 * 2 ** 20), 128 * 2 ** 20))

    flops = 2 * N * Mrow * K * K * Cin * Co_pad
    bytes_accessed = int(n_co * x2.size * 2 + w.size * 2
                         + N * Mrow * Co_pad * 4 + 8 * Co_pad)
    cost = pl.CostEstimate(flops=flops, transcendentals=0,
                           bytes_accessed=bytes_accessed)

    conv_out = pl.pallas_call(
        functools.partial(_conv_kernel, ksize=K, stride=s, Wp=Wp, Mrow=Mrow,
                          use_bn=use_bn, fuse_relu=fuse_relu),
        out_shape=out_shape,
        grid_spec=pltpu.PrefetchScalarGridSpec(
            num_scalar_prefetch=0, grid=grid,
            in_specs=in_specs, out_specs=out_specs,
            scratch_shapes=scratch),
        compiler_params=pltpu.CompilerParams(
            dimension_semantics=sem, vmem_limit_bytes=vmem_limit),
        cost_estimate=cost,
    )(*inputs)

    if use_bn:
        y_flat, stats = conv_out
        count = float(N * Ho * Wo)                     # valid pixels only
        mean = stats[0] / count
        var = jnp.maximum(stats[1] / count - mean * mean, 0.0)
        gamma = jnp.pad(bn_gamma.astype(jnp.float32), (0, Co_pad - Cout),
                        constant_values=1.0)
        beta = jnp.pad(bn_beta.astype(jnp.float32), (0, Co_pad - Cout))
        scale = (gamma * lax.rsqrt(var + bn_eps)).reshape(1, Co_pad)
        shift = (beta - mean * gamma * lax.rsqrt(var + bn_eps)).reshape(1, Co_pad)

        y_flat = pl.pallas_call(
            functools.partial(_bn_norm_kernel,
                              apply_relu=(activation == 'relu')),
            out_shape=jax.ShapeDtypeStruct((N, Mrow, Co_pad), jnp.float32),
            grid_spec=pltpu.PrefetchScalarGridSpec(
                num_scalar_prefetch=0, grid=(N, n_co),
                in_specs=[
                    pl.BlockSpec((1, Mrow, co_t), lambda n, j: (n, 0, j)),
                    pl.BlockSpec((1, co_t), lambda n, j: (0, j)),
                    pl.BlockSpec((1, co_t), lambda n, j: (0, j)),
                ],
                out_specs=pl.BlockSpec((1, Mrow, co_t), lambda n, j: (n, 0, j))),
            compiler_params=pltpu.CompilerParams(
                dimension_semantics=("parallel", "parallel"),
                vmem_limit_bytes=vmem_limit),
        )(y_flat, scale, shift)
    else:
        y_flat = conv_out

    # (N, Ho*Wp, Co_pad) -> drop garbage columns / padded channels -> NCHW
    y = y_flat.reshape(N, Ho, Wp, Co_pad)[:, :, :Wo, :Cout]
    return jnp.transpose(y, (0, 3, 1, 2))


# ---------------------------------------------------------------------------
# Pure-JAX reference (inputs rounded through bf16 to mirror the MXU operands)
# ---------------------------------------------------------------------------
def _reference(x_nchw, weight_oihw, bias, bn_gamma, bn_beta, *,
               stride=1, use_bn=False, activation=None, bn_eps=1e-5):
    K = weight_oihw.shape[-1]
    pad = K // 2
    xq = x_nchw.astype(jnp.bfloat16).astype(jnp.float32)
    wq = weight_oihw.astype(jnp.bfloat16).astype(jnp.float32)
    y = lax.conv_general_dilated(
        xq, wq, window_strides=(stride, stride),
        padding=[(pad, pad), (pad, pad)],
        dimension_numbers=('NCHW', 'OIHW', 'NCHW'),
        precision=lax.Precision.HIGHEST)
    y = y + bias[None, :, None, None]
    if use_bn:
        mean = jnp.mean(y, axis=(0, 2, 3), keepdims=True)
        var = jnp.mean((y - mean) ** 2, axis=(0, 2, 3), keepdims=True)
        y = (y - mean) * lax.rsqrt(var + bn_eps)
        y = y * bn_gamma[None, :, None, None] + bn_beta[None, :, None, None]
    if activation == 'relu':
        y = jnp.maximum(y, 0.0)
    return y


# ---------------------------------------------------------------------------
if __name__ == "__main__":
    key = jax.random.PRNGKey(0)
    k_x, k_w = jax.random.split(key)

    # Small shapes: batch=2, in_channels=4, out_channels=8, spatial=16, kernel=3
    N, Cin, Cout, H, W, K, stride = 2, 4, 8, 16, 16, 3, 1

    x = jax.random.normal(k_x, (N, Cin, H, W), dtype=jnp.float32)
    # Deterministic init mirroring the PyTorch module's __init__:
    weight = 0.01 * jax.random.normal(k_w, (Cout, Cin, K, K), dtype=jnp.float32)
    bias = jnp.zeros((Cout,), dtype=jnp.float32)       # conv.bias.zero_()
    bn_gamma = jnp.ones((Cout,), dtype=jnp.float32)    # bn.weight.fill_(1)
    bn_beta = jnp.zeros((Cout,), dtype=jnp.float32)    # bn.bias.zero_()

    # Default BaseConv config: use_bn=False, activation=None
    out = base_conv_forward(x, weight, bias, bn_gamma, bn_beta,
                            stride=stride, use_bn=False, activation=None)
    out = jax.block_until_ready(out)
    ref = _reference(x, weight, bias, bn_gamma, bn_beta,
                     stride=stride, use_bn=False, activation=None)
    assert out.shape == (N, Cout, H, W)
    assert jnp.allclose(out, ref, atol=1e-3, rtol=1e-3)

    # Optional paths: use_bn=True, activation=relu (training-mode batch stats)
    out_bn = base_conv_forward(x, weight, bias, bn_gamma, bn_beta,
                               stride=stride, use_bn=True, activation='relu')
    out_bn = jax.block_until_ready(out_bn)
    ref_bn = _reference(x, weight, bias, bn_gamma, bn_beta,
                        stride=stride, use_bn=True, activation='relu')
    assert out_bn.shape == (N, Cout, H, W)
    assert jnp.allclose(out_bn, ref_bn, atol=1e-3, rtol=1e-3)

    print("KERNEL_OK")
</pallas_src>

<mosaic_0001>
module attributes {stable_mosaic.version = 11 : i64} {
  func.func @_conv_kernel(%arg0: i32, %arg1: i32, %arg2: i32, %arg3: memref<1x342x4xbf16, #tpu.memory_space<vmem>>, %arg4: memref<9x4x128xbf16, #tpu.memory_space<vmem>>, %arg5: memref<1x128xf32, #tpu.memory_space<vmem>>, %arg6: memref<1x288x128xf32, #tpu.memory_space<vmem>>, %arg7: memref<288x128xf32, #tpu.memory_space<vmem>>) attributes {dimension_semantics = [#tpu.dimension_semantics<parallel>, #tpu.dimension_semantics<parallel>, #tpu.dimension_semantics<arbitrary>], iteration_bounds = array<i64: 1, 2, 1>, scalar_prefetch = 0 : i64, scratch_operands = 1 : i64, tpu.core_type = #tpu.core_type<tc>, window_params = [{transform_indices = @transform_0, window_bounds = array<i64: 1, 342, 4>}, {transform_indices = @transform_1, window_bounds = array<i64: 9, 4, 128>}, {transform_indices = @transform_2, window_bounds = array<i64: 1, 128>}, {transform_indices = @transform_3, window_bounds = array<i64: 1, 288, 128>}]} {
    %c0_i32 = arith.constant 0 : i32
    %0 = arith.cmpi eq, %arg2, %c0_i32 : i32
    %1 = arith.extui %0 : i1 to i32
    %c0_i32_0 = arith.constant 0 : i32
    %2 = arith.cmpi ne, %1, %c0_i32_0 : i32
    scf.if %2 {
      %cst_54 = arith.constant 0.000000e+00 : f32
      %62 = vector.broadcast %cst_54 : f32 to vector<288x128xf32>
      %c0_55 = arith.constant 0 : index
      %c0_56 = arith.constant 0 : index
      %63 = vector.load %arg7[%c0_55, %c0_56] : memref<288x128xf32, #tpu.memory_space<vmem>>, vector<288x128xf32>
      tpu.vector_store %arg7[%c0_55, %c0_56], %62 {strides = array<i32>} : memref<288x128xf32, #tpu.memory_space<vmem>>, vector<288x128xf32>,
    } else {
    }
    %c0 = arith.constant 0 : index
    %c0_1 = arith.constant 0 : index
    %3 = vector.load %arg7[%c0, %c0_1] : memref<288x128xf32, #tpu.memory_space<vmem>>, vector<288x128xf32>
    %c0_2 = arith.constant 0 : index
    %c0_3 = arith.constant 0 : index
    %c0_4 = arith.constant 0 : index
    %4 = vector.load %arg3[%c0_2, %c0_3, %c0_4] : memref<1x342x4xbf16, #tpu.memory_space<vmem>>, vector<1x288x4xbf16>
    %5 = vector.shape_cast %4 : vector<1x288x4xbf16> to vector<288x4xbf16>
    %c0_5 = arith.constant 0 : index
    %c0_6 = arith.constant 0 : index
    %c0_7 = arith.constant 0 : index
    %6 = vector.load %arg4[%c0_5, %c0_6, %c0_7] : memref<9x4x128xbf16, #tpu.memory_space<vmem>>, vector<1x4x128xbf16>
    %7 = vector.shape_cast %6 : vector<1x4x128xbf16> to vector<4x128xbf16>
    %cst = arith.constant dense<0.000000e+00> : vector<288x128xf32>
    %8 = tpu.matmul %5, %7, %cst {dimension_numbers = #tpu.dot_dimension_numbers<[1], [0], [0], [1], [0, 0, 1, 1], [], []>} : vector<288x4xbf16>, vector<4x128xbf16>, vector<288x128xf32> -> vector<288x128xf32>
    %9 = arith.addf %3, %8 : vector<288x128xf32>
    %c0_8 = arith.constant 0 : index
    %c1 = arith.constant 1 : index
    %c0_9 = arith.constant 0 : index
    %10 = vector.load %arg3[%c0_8, %c1, %c0_9] : memref<1x342x4xbf16, #tpu.memory_space<vmem>>, vector<1x288x4xbf16>
    %11 = vector.shape_cast %10 : vector<1x288x4xbf16> to vector<288x4xbf16>
    %c1_10 = arith.constant 1 : index
    %c0_11 = arith.constant 0 : index
    %c0_12 = arith.constant 0 : index
    %12 = vector.load %arg4[%c1_10, %c0_11, %c0_12] : memref<9x4x128xbf16, #tpu.memory_space<vmem>>, vector<1x4x128xbf16>
    %13 = vector.shape_cast %12 : vector<1x4x128xbf16> to vector<4x128xbf16>
    %cst_13 = arith.constant dense<0.000000e+00> : vector<288x128xf32>
    %14 = tpu.matmul %11, %13, %cst_13 {dimension_numbers = #tpu.dot_dimension_numbers<[1], [0], [0], [1], [0, 0, 1, 1], [], []>} : vector<288x4xbf16>, vector<4x128xbf16>, vector<288x128xf32> -> vector<288x128xf32>
    %15 = arith.addf %9, %14 : vector<288x128xf32>
    %c0_14 = arith.constant 0 : index
    %c2 = arith.constant 2 : index
    %c0_15 = arith.constant 0 : index
    %16 = vector.load %arg3[%c0_14, %c2, %c0_15] : memref<1x342x4xbf16, #tpu.memory_space<vmem>>, vector<1x288x4xbf16>
    %17 = vector.shape_cast %16 : vector<1x288x4xbf16> to vector<288x4xbf16>
    %c2_16 = arith.constant 2 : index
    %c0_17 = arith.constant 0 : index
    %c0_18 = arith.constant 0 : index
    %18 = vector.load %arg4[%c2_16, %c0_17, %c0_18] : memref<9x4x128xbf16, #tpu.memory_space<vmem>>, vector<1x4x128xbf16>
    %19 = vector.shape_cast %18 : vector<1x4x128xbf16> to vector<4x128xbf16>
    %cst_19 = arith.constant dense<0.000000e+00> : vector<288x128xf32>
    %20 = tpu.matmul %17, %19, %cst_19 {dimension_numbers = #tpu.dot_dimension_numbers<[1], [0], [0], [1], [0, 0, 1, 1], [], []>} : vector<288x4xbf16>, vector<4x128xbf16>, vector<288x128xf32> -> vector<288x128xf32>
    %21 = arith.addf %15, %20 : vector<288x128xf32>
    %c0_20 = arith.constant 0 : index
    %c18 = arith.constant 18 : index
    %c0_21 = arith.constant 0 : index
    %22 = vector.load %arg3[%c0_20, %c18, %c0_21] : memref<1x342x4xbf16, #tpu.memory_space<vmem>>, vector<1x288x4xbf16>
    %23 = vector.shape_cast %22 : vector<1x288x4xbf16> to vector<288x4xbf16>
    %c3 = arith.constant 3 : index
    %c0_22 = arith.constant 0 : index
    %c0_23 = arith.constant 0 : index
    %24 = vector.load %arg4[%c3, %c0_22, %c0_23] : memref<9x4x128xbf16, #tpu.memory_space<vmem>>, vector<1x4x128xbf16>
    %25 = vector.shape_cast %24 : vector<1x4x128xbf16> to vector<4x128xbf16>
    %cst_24 = arith.constant dense<0.000000e+00> : vector<288x128xf32>
    %26 = tpu.matmul %23, %25, %cst_24 {dimension_numbers = #tpu.dot_dimension_numbers<[1], [0], [0], [1], [0, 0, 1, 1], [], []>} : vector<288x4xbf16>, vector<4x128xbf16>, vector<288x128xf32> -> vector<288x128xf32>
    %27 = arith.addf %21, %26 : vector<288x128xf32>
    %c0_25 = arith.constant 0 : index
    %c19 = arith.constant 19 : index
    %c0_26 = arith.constant 0 : index
    %28 = vector.load %arg3[%c0_25, %c19, %c0_26] : memref<1x342x4xbf16, #tpu.memory_space<vmem>>, vector<1x288x4xbf16>
    %29 = vector.shape_cast %28 : vector<1x288x4xbf16> to vector<288x4xbf16>
    %c4 = arith.constant 4 : index
    %c0_27 = arith.constant 0 : index
    %c0_28 = arith.constant 0 : index
    %30 = vector.load %arg4[%c4, %c0_27, %c0_28] : memref<9x4x128xbf16, #tpu.memory_space<vmem>>, vector<1x4x128xbf16>
    %31 = vector.shape_cast %30 : vector<1x4x128xbf16> to vector<4x128xbf16>
    %cst_29 = arith.constant dense<0.000000e+00> : vector<288x128xf32>
    %32 = tpu.matmul %29, %31, %cst_29 {dimension_numbers = #tpu.dot_dimension_numbers<[1], [0], [0], [1], [0, 0, 1, 1], [], []>} : vector<288x4xbf16>, vector<4x128xbf16>, vector<288x128xf32> -> vector<288x128xf32>
    %33 = arith.addf %27, %32 : vector<288x128xf32>
    %c0_30 = arith.constant 0 : index
    %c20 = arith.constant 20 : index
    %c0_31 = arith.constant 0 : index
    %34 = vector.load %arg3[%c0_30, %c20, %c0_31] : memref<1x342x4xbf16, #tpu.memory_space<vmem>>, vector<1x288x4xbf16>
    %35 = vector.shape_cast %34 : vector<1x288x4xbf16> to vector<288x4xbf16>
    %c5 = arith.constant 5 : index
    %c0_32 = arith.constant 0 : index
    %c0_33 = arith.constant 0 : index
    %36 = vector.load %arg4[%c5, %c0_32, %c0_33] : memref<9x4x128xbf16, #tpu.memory_space<vmem>>, vector<1x4x128xbf16>
    %37 = vector.shape_cast %36 : vector<1x4x128xbf16> to vector<4x128xbf16>
    %cst_34 = arith.constant dense<0.000000e+00> : vector<288x128xf32>
    %38 = tpu.matmul %35, %37, %cst_34 {dimension_numbers = #tpu.dot_dimension_numbers<[1], [0], [0], [1], [0, 0, 1, 1], [], []>} : vector<288x4xbf16>, vector<4x128xbf16>, vector<288x128xf32> -> vector<288x128xf32>
    %39 = arith.addf %33, %38 : vector<288x128xf32>
    %c0_35 = arith.constant 0 : index
    %c36 = arith.constant 36 : index
    %c0_36 = arith.constant 0 : index
    %40 = vector.load %arg3[%c0_35, %c36, %c0_36] : memref<1x342x4xbf16, #tpu.memory_space<vmem>>, vector<1x288x4xbf16>
    %41 = vector.shape_cast %40 : vector<1x288x4xbf16> to vector<288x4xbf16>
    %c6 = arith.constant 6 : index
    %c0_37 = arith.constant 0 : index
    %c0_38 = arith.constant 0 : index
    %42 = vector.load %arg4[%c6, %c0_37, %c0_38] : memref<9x4x128xbf16, #tpu.memory_space<vmem>>, vector<1x4x128xbf16>
    %43 = vector.shape_cast %42 : vector<1x4x128xbf16> to vector<4x128xbf16>
    %cst_39 = arith.constant dense<0.000000e+00> : vector<288x128xf32>
    %44 = tpu.matmul %41, %43, %cst_39 {dimension_numbers = #tpu.dot_dimension_numbers<[1], [0], [0], [1], [0, 0, 1, 1], [], []>} : vector<288x4xbf16>, vector<4x128xbf16>, vector<288x128xf32> -> vector<288x128xf32>
    %45 = arith.addf %39, %44 : vector<288x128xf32>
    %c0_40 = arith.constant 0 : index
    %c37 = arith.constant 37 : index
    %c0_41 = arith.constant 0 : index
    %46 = vector.load %arg3[%c0_40, %c37, %c0_41] : memref<1x342x4xbf16, #tpu.memory_space<vmem>>, vector<1x288x4xbf16>
    %47 = vector.shape_cast %46 : vector<1x288x4xbf16> to vector<288x4xbf16>
    %c7 = arith.constant 7 : index
    %c0_42 = arith.constant 0 : index
    %c0_43 = arith.constant 0 : index
    %48 = vector.load %arg4[%c7, %c0_42, %c0_43] : memref<9x4x128xbf16, #tpu.memory_space<vmem>>, vector<1x4x128xbf16>
    %49 = vector.shape_cast %48 : vector<1x4x128xbf16> to vector<4x128xbf16>
    %cst_44 = arith.constant dense<0.000000e+00> : vector<288x128xf32>
    %50 = tpu.matmul %47, %49, %cst_44 {dimension_numbers = #tpu.dot_dimension_numbers<[1], [0], [0], [1], [0, 0, 1, 1], [], []>} : vector<288x4xbf16>, vector<4x128xbf16>, vector<288x128xf32> -> vector<288x128xf32>
    %51 = arith.addf %45, %50 : vector<288x128xf32>
    %c0_45 = arith.constant 0 : index
    %c38 = arith.constant 38 : index
    %c0_46 = arith.constant 0 : index
    %52 = vector.load %arg3[%c0_45, %c38, %c0_46] : memref<1x342x4xbf16, #tpu.memory_space<vmem>>, vector<1x288x4xbf16>
    %53 = vector.shape_cast %52 : vector<1x288x4xbf16> to vector<288x4xbf16>
    %c8 = arith.constant 8 : index
    %c0_47 = arith.constant 0 : index
    %c0_48 = arith.constant 0 : index
    %54 = vector.load %arg4[%c8, %c0_47, %c0_48] : memref<9x4x128xbf16, #tpu.memory_space<vmem>>, vector<1x4x128xbf16>
    %55 = vector.shape_cast %54 : vector<1x4x128xbf16> to vector<4x128xbf16>
    %cst_49 = arith.constant dense<0.000000e+00> : vector<288x128xf32>
    %56 = tpu.matmul %53, %55, %cst_49 {dimension_numbers = #tpu.dot_dimension_numbers<[1], [0], [0], [1], [0, 0, 1, 1], [], []>} : vector<288x4xbf16>, vector<4x128xbf16>, vector<288x128xf32> -> vector<288x128xf32>
    %57 = arith.addf %51, %56 : vector<288x128xf32>
    %c0_50 = arith.constant 0 : index
    %c0_51 = arith.constant 0 : index
    %58 = vector.load %arg7[%c0_50, %c0_51] : memref<288x128xf32, #tpu.memory_space<vmem>>, vector<288x128xf32>
    tpu.vector_store %arg7[%c0_50, %c0_51], %57 {strides = array<i32>} : memref<288x128xf32, #tpu.memory_space<vmem>>, vector<288x128xf32>,
    %c0_i32_52 = arith.constant 0 : i32
    %59 = arith.cmpi eq, %arg2, %c0_i32_52 : i32
    %60 = arith.extui %59 : i1 to i32
    %c0_i32_53 = arith.constant 0 : i32
    %61 = arith.cmpi ne, %60, %c0_i32_53 : i32
    scf.if %61 {
      %c0_54 = arith.constant 0 : index
      %c0_55 = arith.constant 0 : index
      %62 = vector.load %arg7[%c0_54, %c0_55] : memref<288x128xf32, #tpu.memory_space<vmem>>, vector<288x128xf32>
      %c0_56 = arith.constant 0 : index
      %c0_57 = arith.constant 0 : index
      %63 = vector.load %arg5[%c0_56, %c0_57] : memref<1x128xf32, #tpu.memory_space<vmem>>, vector<1x128xf32>
      %64 = vector.broadcast %63 : vector<1x128xf32> to vector<288x128xf32>
      %65 = arith.addf %62, %64 : vector<288x128xf32>
      %c0_58 = arith.constant 0 : index
      %c0_59 = arith.constant 0 : index
      %c0_60 = arith.constant 0 : index
      %66 = vector.load %arg6[%c0_58, %c0_59, %c0_60] : memref<1x288x128xf32, #tpu.memory_space<vmem>>, vector<1x288x128xf32>
      %67 = vector.shape_cast %66 : vector<1x288x128xf32> to vector<288x128xf32>
      %68 = vector.shape_cast %65 : vector<288x128xf32> to vector<1x288x128xf32>
      tpu.vector_store %arg6[%c0_58, %c0_59, %c0_60], %68 {strides = array<i32>} : memref<1x288x128xf32, #tpu.memory_space<vmem>>, vector<1x288x128xf32>,
    } else {
    }
    return
  }
  func.func @transform_0(%arg0: i32, %arg1: i32, %arg2: i32) -> (i32, i32, i32) {
    %c0_i32 = arith.constant 0 : i32
    %c0_i32_0 = arith.constant 0 : i32
    return %arg1, %c0_i32, %arg2 : i32, i32, i32
  }
  func.func @transform_1(%arg0: i32, %arg1: i32, %arg2: i32) -> (i32, i32, i32) {
    %c0_i32 = arith.constant 0 : i32
    %c0_i32_0 = arith.constant 0 : i32
    return %c0_i32, %arg2, %arg0 : i32, i32, i32
  }
  func.func @transform_2(%arg0: i32, %arg1: i32, %arg2: i32) -> (i32, i32) {
    %c0_i32 = arith.constant 0 : i32
    %c0_i32_0 = arith.constant 0 : i32
    return %c0_i32, %arg0 : i32, i32
  }
  func.func @transform_3(%arg0: i32, %arg1: i32, %arg2: i32) -> (i32, i32, i32) {
    %c0_i32 = arith.constant 0 : i32
    %c0_i32_0 = arith.constant 0 : i32
    return %arg1, %c0_i32, %arg0 : i32, i32, i32
  }
}

</mosaic_0001>

<bundles_post_ra>
// kernel: tpu_custom_call.1
= control target key start
LH: loop header
LB: loop body
LE: loop exit
PB: predicated region body
PF: predicated region fallthrough
CT: control target
= control target key end

     0   :  { %8 = vsyncpa [#allocation4], 0  ;;  %s6653_s0 = inlined_call_operand.vmem [shape: bf16[2,342,4], index: 0, kind: input, shape index: {}]   ;;  %s6654_s1 = inlined_call_operand.vmem [shape: bf16[9,4,128], index: 1, kind: input, shape index: {}]   ;;  %s6655_s2 = inlined_call_operand.vmem [shape: f32[1,128], index: 2, kind: input, shape index: {}]   ;;  %s6656_s3 = inlined_call_operand.hbm [shape: f32[2,288,128], index: 3, kind: output, shape index: {}]  }
   0x1   :  { %10 = vsyncpa [#allocation4 + $0x1], 0  ;;  %s5593_s12 = smov 0   ;;  %s5595_s13 = smov 0  }
   0x2   :  { %s5597_s14 = smov 0   ;;  %s5599_s15 = smov 0  }
   0x3   :  { %s5601_s16 = smov 0   ;;  %s5603_s17 = smov 0  }
   0x4 LB: > { %s4264_s18 = sadd.s32 4294967295, %s5568_s17   ;;  %s4265_s19 = sadd.s32 4294967294, %s5568_s17   ;;  %s5568_s17 = sphi %s5603_s17, %s16_s17   ;;  %s5564_s16 = sphi %s5601_s16, %s6663_s16   ;;  %s5560_s15 = sphi %s5599_s15, %s6662_s15   ;;  %s5556_s14 = sphi %s5597_s14, %s6661_s14   ;;  %s5552_s13 = sphi %s5595_s13, %s6660_s13   ;;  %s5548_s12 = sphi %s5593_s12, %s6659_s12  }
   0x5   : > { %s31_s20 = sadd.s32 1, %s5564_s16  ;;  %s126_s21 = sadd.s32 1, %s5556_s14 }
   0x6   : > { %p33_p0 = scmp.ge.s32.totalorder %s31_s20, 2  ;;  %p136_p1 = scmp.ne.s32.totalorder %s5556_s14, %s5552_s13 }
   0x7   : > { %p137_p2 = scmp.eq.s32.totalorder %s4264_s18, 1  ;;  %p142_p3 = scmp.ne.s32.totalorder %s5552_s13, %s5548_s12 }
   0x8   : > { %s6665_s20 = smov (%p33_p0, %s31_s20), 0  ;;  %p143_p5 = scmp.eq.s32.totalorder %s4265_s19, 1 }
   0x9   : > { %p5633_p4 = por %p137_p2, %p136_p1  ;;  %s121_s23 = ssub.s32 %s5564_s16, %s6665_s20 }
   0xa   : > { %p4270_p6 = scmp.ge.s32.totalorder %s5568_s17, 1  ;;  %p124_p7 = scmp.eq.s32.totalorder %s121_s23, 0 }
   0xb   : > { %p5640_p8 = por %p143_p5, %p142_p3  ;;  %p188_p9 = scmp.lt.s32.totalorder %s5568_s17, 3 }
   0xc   : > { %s5646_s25 = scalar_select %p124_p7, %s5556_s14, %s126_s21  }
   0xd   : > { %p189_p10 = pnand %p4270_p6, %p188_p9 }
   0xe   : > { %v356_v0 = vld [vmem:[%s6654_s1] sm:$0x3] (!%p189_p10)  ;;  %vm502_vm0 = vcmask (!%p189_p10), 1041408   ;;  %p225_p11 = scmp.lt.s32.totalorder (!%p189_p10), %s5560_s15, 1  ;;  %v4404_v2 = vld [vmem:[%s6654_s1 + $0x8] sm:$0x3] (!%p189_p10) }
   0xf   : > { %192 = sbr.rel (%p189_p10) target bundleno = 593 (0x251), region = 32  ;;  %5329 = vmatprep.subr.msk.bf16.mxu1 (!%p189_p10), %vm502_vm0, %v356_v0  ;;  %v504_v1 = vsel (!%p189_p10), %vm502_vm0, %v356_v0, 0  ;;  %5333 = vmatprep.subr.msk.bf16.mxu0 (!%p189_p10), %vm502_vm0, %v4404_v2  ;;  %v5660_v3 = vsel (!%p189_p10), %vm502_vm0, %v4404_v2, 0  ;;  %v4424_v4 = vld [vmem:[%s6654_s1 + $0xa] sm:$0x3] (!%p189_p10)  ;;  %vm447_vm1 = vcmask (!%p189_p10), 31744  }
  0x10   : > { %4698 = vmatpush3.bf16.msra.mxu1 (!%p189_p10), %v504_v1  ;;  %v4308_v5 = vld [vmem:[%s6654_s1 + $0x2] sm:$0x3] (!%p189_p10)  ;;  %4850 = vmatpush3.bf16.msra.mxu0 (!%p189_p10), %v5660_v3  ;;  %vm2029_vm2 = vsmask.f32 (!%p189_p10), 6400  ;;  %v5680_v7 = vld [vmem:[%s6654_s1 + $0x4] sm:$0x3] (!%p189_p10) }
  0x11   : > { %5330 = vmatprep.subr.msk.bf16.mxu1 (!%p189_p10), %vm502_vm0, %v4308_v5  ;;  %5335 = vmatprep.subr.msk.bf16.mxu0 (!%p189_p10), %vm502_vm0, %v4424_v4  ;;  %v1055_v9 = vsel (!%p189_p10), %vm502_vm0, %v4308_v5, 0  ;;  %v2569_v40 = vsel (!%p189_p10), %vm502_vm0, %v4424_v4, 0  ;;  %v5732_v44 = vld [vmem:[%s6654_s1 + $0xc] sm:$0x3] (!%p189_p10)  ;;  %vm2476_vm3 = vcmask (!%p189_p10), 1045504   ;;  %vm1276_vm5 = vcmask (!%p189_p10), 1046528  }
  0x12   : > { %vm851_vm4 = vsmask.f32 (!%p189_p10), 7424  ;;  %vm3229_vm6 = vsmask.f32 (!%p189_p10), 5376  ;;  %vm3676_vm7 = vcmask (!%p189_p10), 1044480   ;;  %s222_s7 = sand.u32 (!%p189_p10), 1, %s5552_s13  }
  0x13   : > { %s5341_s18 = smul.u32 (!%p189_p10), 4608, %s5560_s15  ;;  %s6607_s26 = scalar_lea.sflag (!%p189_p10), [#allocation4], %s222_s7 }
  0x14   : > { %s5570_s28 = smov (!%p189_p10), [#allocation3]  }
  0x15   : > { %s5494_s29 = sshll.u32 (!%p189_p10), %s5570_s28, 4  ;;  %s5495_s29 = int_to_ptr.vmem [resolvable:$false] %s5494_s29 }
  0x16   : > { %s226_s30 = scalar_select %p225_p11, %s5560_s15, 1 }
  0x17   : > { %s6597_s15 = scalar_lea.hbm %s6656_s3, %s5341_s18 }
  0x18   : > { %s5340_s8 = smul.u32 172, %s226_s30  ;;  %s5496_s30 = scalar_lea.vmem %s5495_s29, 9216 }
  0x1a   : > { %s5674_s11 = scalar_lea.vmem %s6653_s0, %s5340_s8  ;;  %s5339_s8 = smul.u32 288, %s222_s7 }
  0x1b   : > { %v5399_v6 = vld [vmem:[%s5674_s11] sm:$0xff]   ;;  %v5400_v8 = vld [vmem:[%s5674_s11 + $0x8] sm:$0xff]   ;;  %v5694_v13 = vld [vmem:[%s5674_s11 + $0x10] sm:$0xff]  }
  0x1c   : > { %4699 = vmatprep.mubr.msk.bf16.mxu1 %vm447_vm1, %v5399_v6  ;;  %v1584_v10 = vld [vmem:[%s5674_s11 + $0x8] sm:$0xe]  ;;  %v5687_v11 = vld [vmem:[%s5674_s11 + $0xc] sm:$0xf]  ;;  %v5403_v14 = vld [vmem:[%s5674_s11 + $0x10] sm:$0xff]   ;;  %v2039_v17 = vshrl.u32 %v5694_v13, 16 }
  0x1d   : > { %4700 = vmatmul.mubr.msk.bf16.vlgmr.msra.gmra.mrb[0].mxu1 %vm447_vm1, %v5400_v8  ;;  %v5691_v12 = vcombine.low %v1584_v10, %v5687_v11  ;;  %v2042_v18 = vshll.u32 %v5694_v13, 16  ;;  %v5705_v19 = vld [vmem:[%s5674_s11 + $0x18] sm:$0xff]   ;;  %v5709_v25 = vld [vmem:[%s5674_s11 + $0x20] sm:$0xff]   ;;  %v5717_v35 = vld [vmem:[%s5674_s11 + $0x28] sm:$0xff]  }
  0x1e   : > { %4736 = vmatpush3.bf16.msra.mxu1 %v1055_v9  ;;  %4703 = vmatprep.mubr.msk.bf16.mxu1 %vm447_vm1, %v5403_v14  ;;  %v2041_v22 = vrot.slane %v2039_v17, 1  ;;  %v5405_v24 = vld [vmem:[%s5674_s11 + $0x18] sm:$0xff]   ;;  %v2048_v26 = vshrl.u32 %v5705_v19, 16  ;;  %v2051_v27 = vshll.u32 %v5705_v19, 16  ;;  %v2057_v30 = vshrl.u32 %v5709_v25, 16  ;;  %v5407_v34 = vld [vmem:[%s5674_s11 + $0x20] sm:$0xff]  }
  0x1f   : > { %v2031_v15 = vshrl.u32 %v5691_v12, 16  ;;  %v2034_v16 = vshll.u32 %v5691_v12, 16  ;;  %5331 = vmatprep.subr.msk.bf16.mxu1 %vm502_vm0, %v5680_v7  ;;  %v2044_v23 = vrot.slane %v2042_v18, 2  ;;  %v2060_v31 = vshll.u32 %v5709_v25, 16  ;;  %v5727_v43 = vld [vmem:[%s5674_s11 + $0x30] sm:$0xff]   ;;  %v5409_v49 = vld [vmem:[%s5674_s11 + $0x28] sm:$0xff]  }
  0x20   : > { %v2050_v32 = vrot.slane %v2048_v26, 1  ;;  %v2053_v33 = vrot.slane %v2051_v27, 2  ;;  %v2059_v37 = vrot.slane %v2057_v30, 1  ;;  %v2066_v41 = vshrl.u32 %v5717_v35, 16  ;;  %v5741_v53 = vld [vmem:[%s5674_s11 + $0x38] sm:$0xff]   ;;  %v5411_v56 = vld [vmem:[%s5674_s11 + $0x30] sm:$0xff]  }
  0x21   : > { %v2033_v20 = vrot.slane %v2031_v15, 1  ;;  %v2036_v21 = vrot.slane %v2034_v16, 2  ;;  %v2045_v29 = vor.u32 %v2044_v23, %v2041_v22  ;;  %v2062_v38 = vrot.slane %v2060_v31, 2  ;;  %v5748_v60 = vld [vmem:[%s5674_s11 + $0x40] sm:$0xff]   ;;  %v5758_v4 = vld [vmem:[%s5674_s11 + $0x48] sm:$0xff]   ;;  %v5762_v9 = vld [vmem:[%s5674_s11 + $0x50] sm:$0xff]  }
  0x22   : > { %v2054_v39 = vor.u32 %v2053_v33, %v2050_v32  ;;  %v2069_v42 = vshll.u32 %v5717_v35, 16  ;;  %v2068_v47 = vrot.slane %v2066_v41, 1  ;;  %v2075_v50 = vshrl.u32 %v5727_v43, 16  ;;  %v5413_v10 = vld [vmem:[%s5674_s11 + $0x38] sm:$0xff]   ;;  %v5415_v16 = vld [vmem:[%s5674_s11 + $0x40] sm:$0xff]   ;;  %v5417_v30 = vld [vmem:[%s5674_s11 + $0x48] sm:$0xff]  }
  0x23   : > { %v2037_v28 = vor.u32 %v2036_v21, %v2033_v20  ;;  %v2063_v45 = vor.u32 %v2062_v38, %v2059_v37  ;;  %v2078_v52 = vshll.u32 %v5727_v43, 16  ;;  %v2084_v58 = vshrl.u32 %v5741_v53, 16  ;;  %v5776_v26 = vld [vmem:[%s5674_s11 + $0x58] sm:$0xff]   ;;  %v5419_v32 = vld [vmem:[%s5674_s11 + $0x50] sm:$0xff]   ;;  %v2470_v37 = vld [vmem:[%s5674_s11 + $0x8] sm:$0xc] }
  0x24   : > { %v2055_v46 = vsel %vm2029_vm2, %v2045_v29, %v2054_v39  ;;  %v2071_v48 = vrot.slane %v2069_v42, 2  ;;  %v2077_v55 = vrot.slane %v2075_v50, 1  ;;  %v2087_v59 = vshll.u32 %v5741_v53, 16 }
  0x25   : > { %v2046_v36 = vsel %vm2029_vm2, %v2037_v28, %v2045_v29  ;;  %4704 = vmatmul.mubr.msk.bf16.gmra.mrb[4].mxu1 %vm447_vm1, %v5405_v24  ;;  %v2064_v51 = vsel %vm2029_vm2, %v2054_v39, %v2063_v45  ;;  %v2080_v57 = vrot.slane %v2078_v52, 2  ;;  %v2086_v62 = vrot.slane %v2084_v58, 1  ;;  %v5805_v52 = vld [vmem:[%s5674_s11 + $0x4] sm:$0xf] }
  0x26   : > { %4851 = vmatprep.mubr.msk.bf16.mxu0 %vm447_vm1, %v2046_v36  ;;  %4707 = vmatprep.mubr.msk.bf16.mxu1 %vm447_vm1, %v5407_v34  ;;  %v2072_v54 = vor.u32 %v2071_v48, %v2068_v47  ;;  %v2089_v63 = vrot.slane %v2087_v59, 2  ;;  %v2093_v0 = vshrl.u32 %v5748_v60, 16  ;;  %v2096_v2 = vshll.u32 %v5748_v60, 16  ;;  %v5423_v47 = vld [vmem:[%s5674_s11 + $0x60] sm:$0xff]  }
  0x27   : > { %4852 = vmatmul.mubr.msk.bf16.vlgmr.msra.gmra.mrb[0].mxu0 %vm447_vm1, %v2055_v46  ;;  %v2081_v61 = vor.u32 %v2080_v57, %v2077_v55  ;;  %v2102_v14 = vshrl.u32 %v5758_v4, 16  ;;  %v2105_v17 = vshll.u32 %v5758_v4, 16  ;;  %v2111_v20 = vshrl.u32 %v5762_v9, 16  ;;  %v5425_v55 = vld [vmem:[%s5674_s11 + $0x70] sm:$0xff]  }
  0x28   : > { %4888 = vmatpush3.bf16.msra.mxu0 %v2569_v40  ;;  %4855 = vmatprep.mubr.msk.bf16.mxu0 %vm447_vm1, %v2064_v51  ;;  %v2073_v1 = vsel %vm2029_vm2, %v2063_v45, %v2072_v54  ;;  %v2095_v6 = vrot.slane %v2093_v0, 1  ;;  %v2098_v8 = vrot.slane %v2096_v2, 2  ;;  %v2090_v15 = vor.u32 %v2089_v63, %v2086_v62  ;;  %v5421_v45 = vld [vmem:[%s5674_s11 + $0x58] sm:$0xff]   ;;  %v719_v51 = vld [vmem:[%s5674_s11] sm:$0xf] }
  0x29   : > { %5336 = vmatprep.subr.msk.bf16.mxu0 %vm502_vm0, %v5732_v44  ;;  %v2082_v5 = vsel %vm2029_vm2, %v2072_v54, %v2081_v61  ;;  %v2114_v21 = vshll.u32 %v5762_v9, 16  ;;  %v2104_v22 = vrot.slane %v2102_v14, 1  ;;  %v2107_v24 = vrot.slane %v2105_v17, 2  ;;  %v5426_v63 = vld [vmem:[%s5674_s11 + $0x78] sm:$0xff]   ;;  %v5427_v0 = vld [vmem:[%s5674_s11 + $0x80] sm:$0xff]  }
  0x2a   : > { %v2099_v18 = vor.u32 %v2098_v8, %v2095_v6  ;;  %v2091_v23 = vsel %vm2029_vm2, %v2081_v61, %v2090_v15  ;;  %v2113_v28 = vrot.slane %v2111_v20, 1  ;;  %v2120_v33 = vshrl.u32 %v5776_v26, 16  ;;  %v5821_v61 = vld [vmem:[%s5674_s11 + $0x8] sm:$0xff]   ;;  %v5839_v8 = vld [vmem:[%s5674_s11 + $0x10] sm:$0xff]  }
  0x2b   : > { %v2116_v29 = vrot.slane %v2114_v21, 2  ;;  %v2108_v31 = vor.u32 %v2107_v24, %v2104_v22  ;;  %v2123_v34 = vshll.u32 %v5776_v26, 16  ;;  %v4425_v42 = vcombine.low %v2470_v37, %v5687_v11 }
  0x2c   : > { %v2100_v27 = vsel %vm2029_vm2, %v2090_v15, %v2099_v18  ;;  %v2122_v39 = vrot.slane %v2120_v33, 1  ;;  %v2480_v54 = vrot.slane %v5705_v19, 2  ;;  %v4309_v57 = vcombine.low %v719_v51, %v5805_v52  ;;  %v5845_v15 = vld [vmem:[%s5674_s11 + $0x18] sm:$0xff]  }
  0x2d   : > { %4708 = vmatmul.mubr.msk.bf16.gmra.mrb[8].mxu1 %vm447_vm1, %v5409_v49  ;;  %v2117_v36 = vor.u32 %v2116_v29, %v2113_v28  ;;  %v2109_v38 = vsel %vm2029_vm2, %v2099_v18, %v2108_v31  ;;  %v2125_v40 = vrot.slane %v2123_v34, 2  ;;  %v2477_v48 = vrot.slane %v4425_v42, 2  ;;  %v5859_v28 = vld [vmem:[%s5674_s11 + $0x20] sm:$0xff]  }
  0x2e   : > { %4711 = vmatprep.mubr.msk.bf16.mxu1 %vm447_vm1, %v5411_v56  ;;  %v2478_v49 = vrot.slane %v5694_v13, 2  ;;  %v5424_v13 = vld [vmem:[%s5674_s11 + $0x68] sm:$0xff]   ;;  %v2482_v56 = vrot.slane %v5709_v25, 2  ;;  %v3008_v59 = vsel %vm502_vm0, %v5732_v44, 0  ;;  %v855_v62 = vshll.u32 %v4309_v57, 16 }
  0x2f   : > { %4856 = vmatmul.mubr.msk.bf16.gmra.mrb[4].mxu0 %vm447_vm1, %v2073_v1  ;;  %v2118_v41 = vsel %vm2029_vm2, %v2108_v31, %v2117_v36  ;;  %v5794_v46 = vor.u32 %v2125_v40, %v2122_v39  ;;  %v5826_v25 = vld [vmem:[%s6654_s1 + $0xe] sm:$0x3]  ;;  %v2484_v44 = vrot.slane %v5717_v35, 2  ;;  %v2486_v1 = vrot.slane %v5727_v43, 2 }
  0x30   : > { %4859 = vmatprep.mubr.msk.bf16.mxu0 %vm447_vm1, %v2082_v5  ;;  %v2479_v11 = vsel %vm2476_vm3, %v2477_v48, %v2478_v49  ;;  %v2481_v58 = vsel %vm2476_vm3, %v2478_v49, %v2480_v54  ;;  %v2483_v19 = vsel %vm2476_vm3, %v2480_v54, %v2482_v56  ;;  %v853_v2 = vshrl.u32 %v4309_v57, 16 }
  0x31   : > { %v2127_v50 = vsel %vm2029_vm2, %v2117_v36, %v5794_v46  ;;  %v857_v5 = vrot.slane %v855_v62, 1  ;;  %v860_v6 = vshll.u32 %v5821_v61, 16  ;;  %v2487_v35 = vsel %vm2476_vm3, %v2484_v44, %v2486_v1 }
  0x32   : > { %v868_v17 = vshll.u32 %v5839_v8, 16  ;;  %v2488_v18 = vrot.slane %v5741_v53, 2  ;;  %v864_v20 = vshrl.u32 %v5821_v61, 16  ;;  %v2490_v21 = vrot.slane %v5748_v60, 2 }
  0x33   : > { %v858_v14 = vor.u32 %v857_v5, %v853_v2  ;;  %v862_v43 = vrot.slane %v860_v6, 1  ;;  %v876_v24 = vshll.u32 %v5845_v15, 16  ;;  %v880_v33 = vshrl.u32 %v5845_v15, 16  ;;  %v5921_v6 = vld [vmem:[%s5674_s11 + $0x68] sm:$0xff]  }
  0x34   : > { %v2489_v29 = vsel %vm2476_vm3, %v2486_v1, %v2488_v18  ;;  %v2491_v53 = vsel %vm2476_vm3, %v2488_v18, %v2490_v21  ;;  %v884_v34 = vshll.u32 %v5859_v28, 16  ;;  %v2492_v36 = vrot.slane %v5758_v4, 2 }
  0x35   : > { %4712 = vmatmul.mubr.msk.bf16.gmra.mrb[12].mxu1 %vm447_vm1, %v5413_v10  ;;  %v2485_v10 = vsel %vm2476_vm3, %v2482_v56, %v2484_v44  ;;  %v863_v22 = vsel %vm851_vm4, %v858_v14, %v862_v43  ;;  %v878_v31 = vrot.slane %v876_v24, 1  ;;  %v2494_v39 = vrot.slane %v5762_v9, 2  ;;  %v5893_v56 = vld [vmem:[%s5674_s11 + $0x38] sm:$0xff]   ;;  %v5946_v24 = vld [vmem:[%s5674_s11 + $0x50] sm:$0xff]  }
  0x36   : > { %4715 = vmatprep.mubr.msk.bf16.mxu1 %vm447_vm1, %v5415_v16  ;;  %v5428_v16 = vld [vmem:[%s5674_s11 + $0x88] sm:$0xff]   ;;  %v888_v42 = vshrl.u32 %v5859_v28, 16  ;;  %v1278_v48 = vrot.slane %v5821_v61, 1  ;;  %v886_v49 = vrot.slane %v884_v34, 1  ;;  %v2496_v9 = vrot.slane %v5776_v26, 2 }
  0x37   : > { %4860 = vmatmul.mubr.msk.bf16.gmra.mrb[8].mxu0 %vm447_vm1, %v2091_v23  ;;  %v872_v23 = vshrl.u32 %v5839_v8, 16  ;;  %v882_v4 = vor.u32 %v880_v33, %v878_v31  ;;  %v1280_v51 = vrot.slane %v5839_v8, 1  ;;  %v2495_v54 = vsel %vm2476_vm3, %v2492_v36, %v2494_v39  ;;  %v5924_v8 = vld [vmem:[%s5674_s11 + $0x70] sm:$0xff]  }
  0x38   : > { %4863 = vmatprep.mubr.msk.bf16.mxu0 %vm447_vm1, %v2100_v27  ;;  %v870_v27 = vrot.slane %v868_v17, 1  ;;  %v1282_v57 = vrot.slane %v5845_v15, 1  ;;  %v1284_v1 = vrot.slane %v5859_v28, 1  ;;  %v5936_v17 = vld [vmem:[%s5674_s11 + $0x48] sm:$0xff]   ;;  %v2500_v33 = vrot.slane %v5921_v6, 2 }
  0x39   : > { %v887_v26 = vsel %vm851_vm4, %v882_v4, %v886_v49  ;;  %v2502_v34 = vrot.slane %v5924_v8, 2  ;;  %v924_v4 = vshll.u32 %v5936_v17, 16 }
  0x3a   : > { %v874_v60 = vor.u32 %v872_v23, %v870_v27  ;;  %v5904_v62 = vsel %vm1276_vm5, %v1280_v51, %v1282_v57  ;;  %v5929_v15 = vsel %vm1276_vm5, %v1282_v57, %v1284_v1 }
  0x3b   : > { %v2503_v57 = vsel %vm2476_vm3, %v2500_v33, %v2502_v34 }
  0x3c   : > { %v879_v40 = vsel %vm851_vm4, %v874_v60, %v878_v31  ;;  %v5953_v60 = vld [vmem:[%s5674_s11 + $0x58] sm:$0xff]  }
  0x3d   : > { %4716 = vmatmul.mubr.msk.bf16.gmra.mrb[16].mxu1 %vm447_vm1, %v5417_v30  ;;  %v866_v30 = vor.u32 %v864_v20, %v862_v43  ;;  %v5441_v43 = vld [vmem:[%s5674_s11 + $0x40] sm:$0xff]   ;;  %v1290_v20 = vrot.slane %v5893_v56, 1 }
  0x3e   : > { %4719 = vmatprep.mubr.msk.bf16.mxu1 %vm447_vm1, %v5419_v32  ;;  %v5865_v32 = vld [vmem:[%s5674_s11 + $0x28] sm:$0xff]  }
  0x3f   : > { %4864 = vmatmul.mubr.msk.bf16.gmra.mrb[12].mxu0 %vm447_vm1, %v2109_v38  ;;  %v871_v37 = vsel %vm851_vm4, %v866_v30, %v870_v27  ;;  %v1369_v38 = vsel %vm502_vm0, %v5680_v7, 0  ;;  %v2493_v7 = vsel %vm2476_vm3, %v2490_v21, %v2492_v36  ;;  %v896_v61 = vshrl.u32 %v5865_v32, 16 }
  0x40   : > { %4867 = vmatprep.mubr.msk.bf16.mxu0 %vm447_vm1, %v2118_v41  ;;  %v5878_v41 = vld [vmem:[%s5674_s11 + $0x60] sm:$0xff]   ;;  %v1286_v2 = vrot.slane %v5865_v32, 1  ;;  %v2497_v21 = vsel %vm2476_vm3, %v2494_v39, %v2496_v9  ;;  %v1292_v27 = vrot.slane %v5441_v43, 1  ;;  %v916_v36 = vshll.u32 %v5441_v43, 16 }
  0x42   : > { %v5956_v31 = vsel %vm1276_vm5, %v1290_v20, %v1292_v27 }
  0x45   : > { %4720 = vmatmul.mubr.msk.bf16.gmra.mrb[20].mxu1 %vm447_vm1, %v5421_v45  ;;  %v892_v45 = vshll.u32 %v5865_v32, 16  ;;  %v1296_v32 = vrot.slane %v5946_v24, 1 }
  0x46   : > { %4723 = vmatprep.mubr.msk.bf16.mxu1 %vm447_vm1, %v5423_v47  ;;  %v5437_v47 = vld [vmem:[%s5674_s11 + $0x30] sm:$0xff]  }
  0x47   : > { %4868 = vmatmul.mubr.msk.bf16.gmra.mrb[16].mxu0 %vm447_vm1, %v2127_v50  ;;  %v1270_v50 = vld [vmem:[%s5674_s11] sm:$0xe]  ;;  %v904_v44 = vshrl.u32 %v5437_v47, 16 }
  0x48   : > { %4889 = vmatprep.mubr.msk.bf16.mxu0 %vm447_vm1, %v2479_v11  ;;  %v4347_v11 = vcombine.low %v1270_v50, %v5805_v52  ;;  %v2498_v52 = vrot.slane %v5878_v41, 2  ;;  %v5979_v50 = vld [vmem:[%s5674_s11 + $0x68] sm:$0xff]  }
  0x4d   : > { %4724 = vmatmul.mubr.msk.bf16.gmra.mrb[24].mxu1 %vm447_vm1, %v5424_v13  ;;  %v890_v13 = vor.u32 %v888_v42, %v886_v49 }
  0x4e   : > { %4727 = vmatprep.mubr.msk.bf16.mxu1 %vm447_vm1, %v5425_v55  ;;  %v894_v55 = vrot.slane %v892_v45, 1  ;;  %v1298_v45 = vrot.slane %v5953_v60, 1 }
  0x4f   : > { %4890 = vmatmul.mubr.msk.bf16.vlgmr.msra.gmra.mrb[0].mxu0 %vm447_vm1, %v2481_v58  ;;  %v900_v58 = vshll.u32 %v5437_v47, 16 }
  0x50   : > { %4926 = vmatpush3.bf16.msra.mxu0 %v3008_v59  ;;  %4893 = vmatprep.mubr.msk.bf16.mxu0 %vm447_vm1, %v2483_v19  ;;  %v1277_v59 = vrot.slane %v4347_v11, 1  ;;  %v5897_v19 = vsel %vm1276_vm5, %v1278_v48, %v1280_v51  ;;  %v895_v5 = vsel %vm851_vm4, %v890_v13, %v894_v55  ;;  %v898_v23 = vor.u32 %v896_v61, %v894_v55  ;;  %v5994_v55 = vld [vmem:[%s5674_s11 + $0x70] sm:$0xff]   ;;  %v6002_v61 = vld [vmem:[%s5674_s11 + $0x78] sm:$0xff]  }
  0x51   : > { %5337 = vmatprep.subr.msk.bf16.mxu0 %vm502_vm0, %v5826_v25  ;;  %v902_v14 = vrot.slane %v900_v58, 1  ;;  %v918_v11 = vrot.slane %v916_v36, 1  ;;  %v5999_v58 = vld [vmem:[%s5674_s11 + $0x80] sm:$0xff]   ;;  %v6042_v36 = vld [vmem:[%s5674_s11 + $0x90] ss:$0 sps:$4 sm:$0x11]  }
  0x53   : > { %v906_v28 = vor.u32 %v904_v44, %v902_v14  ;;  %v903_v39 = vsel %vm851_vm4, %v898_v23, %v902_v14  ;;  %v940_v23 = vshll.u32 %v5953_v60, 16 }
  0x55   : > { %4728 = vmatmul.mubr.msk.bf16.gmra.mrb[28].mxu1 %vm447_vm1, %v5426_v63  ;;  %v5909_v63 = vld [vmem:[%s6654_s1 + $0x6] sm:$0x3] }
  0x56   : > { %4731 = vmatprep.mubr.msk.bf16.mxu1 %vm447_vm1, %v5427_v0  ;;  %v5913_v0 = vsel %vm1276_vm5, %v1277_v59, %v1278_v48  ;;  %v920_v48 = vshrl.u32 %v5441_v43, 16  ;;  %v1306_v43 = vrot.slane %v6002_v61, 1 }
  0x57   : > { %4894 = vmatmul.mubr.msk.bf16.gmra.mrb[4].mxu0 %vm447_vm1, %v2485_v10  ;;  %v908_v10 = vshll.u32 %v5893_v56, 16 }
  0x58   : > { %4897 = vmatprep.mubr.msk.bf16.mxu0 %vm447_vm1, %v2487_v35  ;;  %v1288_v35 = vrot.slane %v5437_v47, 1  ;;  %v922_v59 = vor.u32 %v920_v48, %v918_v11  ;;  %v942_v48 = vrot.slane %v940_v23, 1  ;;  %v6081_v23 = vld [vmem:[%s5674_s11 + $0x18] sm:$0xff]  }
  0x5a   : > { %v5939_v18 = vsel %vm1276_vm5, %v1286_v2, %v1288_v35  ;;  %v5949_v30 = vsel %vm1276_vm5, %v1288_v35, %v1290_v20  ;;  %v6015_v35 = vld [vmem:[%s5674_s11 + $0x80] sm:$0xff]   ;;  %v2506_v20 = vrot.slane %v5999_v58, 2 }
  0x5d   : > { %4732 = vmatmul.mubr.msk.bf16.gmra.mrb[32].mxu1 %vm447_vm1, %v5428_v16  ;;  %v5932_v16 = vsel %vm1276_vm5, %v1284_v1, %v1286_v2  ;;  %v932_v2 = vshll.u32 %v5946_v24, 16 }
  0x5e   : > { %4737 = vmatprep.mubr.msk.bf16.mxu1 %vm447_vm1, %v863_v22  ;;  %v2499_v22 = vsel %vm2476_vm3, %v2496_v9, %v2498_v52  ;;  %v5986_v9 = vld [vmem:[%s5674_s11 + $0x78] sm:$0xff]  }
  0x5f   : > { %4898 = vmatmul.mubr.msk.bf16.gmra.mrb[8].mxu0 %vm447_vm1, %v2489_v29  ;;  %v910_v29 = vrot.slane %v908_v10, 1  ;;  %v2504_v1 = vrot.slane %v5986_v9, 2  ;;  %v928_v10 = vshrl.u32 %v5936_v17, 16 }
  0x60   : > { %4901 = vmatprep.mubr.msk.bf16.mxu0 %vm447_vm1, %v2491_v53  ;;  %v1294_v53 = vrot.slane %v5936_v17, 1 }
  0x61   : > { %v911_v47 = vsel %vm851_vm4, %v906_v28, %v910_v29  ;;  %v1308_v28 = vrot.slane %v6015_v35, 1 }
  0x62   : > { %v5972_v42 = vsel %vm1276_vm5, %v1294_v53, %v1296_v32 }
  0x65   : > { %4738 = vmatmul.mubr.msk.bf16.vlgmr.msra.gmra.mrb[0].mxu1 %vm447_vm1, %v871_v37  ;;  %v5963_v37 = vld [vmem:[%s5674_s11 + $0x60] sm:$0xff]  }
  0x66   : > { %4741 = vmatprep.mubr.msk.bf16.mxu1 %vm447_vm1, %v879_v40  ;;  %4774 = vmatpush3.bf16.msra.mxu1 %v1369_v38  ;;  %v5966_v38 = vsel %vm1276_vm5, %v1292_v27, %v1294_v53  ;;  %v912_v40 = vshrl.u32 %v5893_v56, 16  ;;  %v1300_v49 = vrot.slane %v5963_v37, 1  ;;  %v1302_v56 = vrot.slane %v5979_v50, 1  ;;  %v6026_v27 = vld [vmem:[%s5674_s11 + $0x88] sm:$0xff]  }
  0x67   : > { %4902 = vmatmul.mubr.msk.bf16.gmra.mrb[12].mxu0 %vm447_vm1, %v2493_v7  ;;  %5332 = vmatprep.subr.msk.bf16.mxu1 %vm502_vm0, %v5909_v63  ;;  %v5982_v7 = vsel %vm1276_vm5, %v1296_v32, %v1298_v45  ;;  %v934_v53 = vrot.slane %v932_v2, 1  ;;  %v2505_v32 = vsel %vm2476_vm3, %v2502_v34, %v2504_v1  ;;  %v956_v2 = vshll.u32 %v5979_v50, 16 }
  0x68   : > { %4905 = vmatprep.mubr.msk.bf16.mxu0 %vm447_vm1, %v2495_v54  ;;  %v5989_v51 = vsel %vm1276_vm5, %v1298_v45, %v1300_v49  ;;  %v2501_v54 = vsel %vm2476_vm3, %v2498_v52, %v2500_v33  ;;  %v914_v13 = vor.u32 %v912_v40, %v910_v29  ;;  %v6005_v44 = vsel %vm1276_vm5, %v1300_v49, %v1302_v56  ;;  %v6034_v29 = vld [vmem:[%s5674_s11 + $0x88] sm:$0xff]  }
  0x69   : > { %v1304_v52 = vrot.slane %v5994_v55, 1  ;;  %v1310_v40 = vrot.slane %v6026_v27, 1  ;;  %v2507_v45 = vsel %vm2476_vm3, %v2504_v1, %v2506_v20  ;;  %v2508_v49 = vrot.slane %v6034_v29, 2 }
  0x6a   : > { %v952_v1 = vshrl.u32 %v5963_v37, 16 }
  0x6b   : > { %v6018_v14 = vsel %vm1276_vm5, %v1302_v56, %v1304_v52  ;;  %v6029_v17 = vsel %vm1276_vm5, %v1304_v52, %v1306_v43  ;;  %v6050_v34 = vsel %vm1276_vm5, %v1308_v28, %v1310_v40  ;;  %v944_v56 = vshrl.u32 %v5953_v60, 16  ;;  %v6066_v52 = vld [vmem:[%s5674_s11 + $0x14] sm:$0xf]  ;;  %v6074_v60 = vld [vmem:[%s5674_s11 + $0x98] ss:$0 sps:$4 sm:$0x33]  }
  0x6d   : > { %4742 = vmatmul.mubr.msk.bf16.gmra.mrb[4].mxu1 %vm447_vm1, %v887_v26  ;;  %v926_v26 = vrot.slane %v924_v4, 1  ;;  %v1312_v4 = vrot.slane %v6042_v36, 1 }
  0x6e   : > { %4745 = vmatprep.mubr.msk.bf16.mxu1 %vm447_vm1, %v895_v5  ;;  %v919_v5 = vsel %vm851_vm4, %v914_v13, %v918_v11  ;;  %v948_v11 = vshll.u32 %v5963_v37, 16 }
  0x6f   : > { %4906 = vmatmul.mubr.msk.bf16.gmra.mrb[16].mxu0 %vm447_vm1, %v2497_v21  ;;  %v927_v21 = vsel %vm851_vm4, %v922_v59, %v926_v26  ;;  %v930_v33 = vor.u32 %v928_v10, %v926_v26  ;;  %v2784_v26 = vld [vmem:[%s5674_s11 + $0x10] sm:$0xc]  ;;  %v2509_v10 = vsel %vm2476_vm3, %v2506_v20, %v2508_v49  ;;  %v2512_v20 = vrot.slane %v6074_v60, 2 }
  0x70   : > { %4909 = vmatprep.mubr.msk.bf16.mxu0 %vm447_vm1, %v2499_v22  ;;  %v936_v22 = vshrl.u32 %v5946_v24, 16  ;;  %v6039_v24 = vld [vmem:[%s5674_s11 + $0x90] sm:$0xff]  }
  0x71   : > { %v2510_v13 = vrot.slane %v6039_v24, 2 }
  0x75   : > { %4746 = vmatmul.mubr.msk.bf16.gmra.mrb[8].mxu1 %vm447_vm1, %v903_v39  ;;  %v6045_v39 = vsel %vm1276_vm5, %v1306_v43, %v1308_v28  ;;  %v946_v43 = vor.u32 %v944_v56, %v942_v48  ;;  %v958_v28 = vrot.slane %v956_v2, 1 }
  0x76   : > { %4749 = vmatprep.mubr.msk.bf16.mxu1 %vm447_vm1, %v911_v47  ;;  %v938_v47 = vor.u32 %v936_v22, %v934_v53  ;;  %v2511_v22 = vsel %vm2476_vm3, %v2508_v49, %v2510_v13 }
  0x77   : > { %4910 = vmatmul.mubr.msk.bf16.gmra.mrb[20].mxu0 %vm447_vm1, %v2501_v54  ;;  %v935_v54 = vsel %vm851_vm4, %v930_v33, %v934_v53  ;;  %v964_v53 = vshll.u32 %v5994_v55, 16 }
  0x78   : > { %4913 = vmatprep.mubr.msk.bf16.mxu0 %vm447_vm1, %v2503_v57  ;;  %v6061_v57 = vsel %vm1276_vm5, %v1310_v40, %v1312_v4  ;;  %v943_v59 = vsel %vm851_vm4, %v938_v47, %v942_v48  ;;  %v960_v40 = vshrl.u32 %v5979_v50, 16  ;;  %v968_v48 = vshrl.u32 %v5994_v55, 16 }
  0x79   : > { %v972_v4 = vshll.u32 %v6002_v61, 16  ;;  %v966_v49 = vrot.slane %v964_v53, 1  ;;  %v980_v55 = vshll.u32 %v6015_v35, 16 }
  0x7a   : > { %v962_v56 = vor.u32 %v960_v40, %v958_v28  ;;  %v6124_v40 = vld [vmem:[%s5674_s11 + $0x38] sm:$0xff]  }
  0x7c   : > { %v967_v2 = vsel %vm851_vm4, %v962_v56, %v966_v49 }
  0x7d   : > { %4750 = vmatmul.mubr.msk.bf16.gmra.mrb[12].mxu1 %vm447_vm1, %v919_v5  ;;  %v950_v5 = vrot.slane %v948_v11, 1  ;;  %v2513_v11 = vsel %vm2476_vm3, %v2510_v13, %v2512_v20  ;;  %v6118_v20 = vld [vmem:[%s5674_s11 + $0x30] sm:$0xff]  }
  0x7e   : > { %4753 = vmatprep.mubr.msk.bf16.mxu1 %vm447_vm1, %v927_v21  ;;  %v6077_v21 = vcombine.low %v2784_v26, %v6066_v52  ;;  %v970_v26 = vor.u32 %v968_v48, %v966_v49  ;;  %v6129_v48 = vld [vmem:[%s6654_s1 + $0x10] sm:$0x3]  ;;  %v996_v49 = vshll.u32 %v6042_v36, 16 }
  0x7f   : > { %4914 = vmatmul.mubr.msk.bf16.gmra.mrb[24].mxu0 %vm447_vm1, %v2505_v32  ;;  %v954_v37 = vor.u32 %v952_v1, %v950_v5  ;;  %v951_v32 = vsel %vm851_vm4, %v946_v43, %v950_v5  ;;  %v974_v1 = vrot.slane %v972_v4, 1  ;;  %v976_v5 = vshrl.u32 %v6002_v61, 16 }
  0x80   : > { %4917 = vmatprep.mubr.msk.bf16.mxu0 %vm447_vm1, %v2507_v45  ;;  %v2916_v33 = vrot.slane %v6077_v21, 2  ;;  %v2917_v45 = vrot.slane %v6081_v23, 2  ;;  %v3455_v61 = vsel %vm502_vm0, %v5826_v25, 0  ;;  %v2923_v25 = vrot.slane %v6118_v20, 2 }
  0x81   : > { %v959_v47 = vsel %vm851_vm4, %v954_v37, %v958_v28  ;;  %v975_v43 = vsel %vm851_vm4, %v970_v26, %v974_v1  ;;  %v988_v37 = vshll.u32 %v6026_v27, 16  ;;  %v982_v28 = vrot.slane %v980_v55, 1  ;;  %v6145_v26 = vld [vmem:[%s5674_s11 + $0x40] sm:$0xff]   ;;  %v6149_v55 = vld [vmem:[%s5674_s11 + $0x48] sm:$0xff]  }
  0x82   : > { %v2918_v50 = vsel %vm2476_vm3, %v2916_v33, %v2917_v45  ;;  %v992_v4 = vshrl.u32 %v6026_v27, 16 }
  0x85   : > { %4754 = vmatmul.mubr.msk.bf16.gmra.mrb[16].mxu1 %vm447_vm1, %v935_v54  ;;  %v6098_v54 = vld [vmem:[%s5674_s11 + $0x20] sm:$0xff]  }
  0x86   : > { %4757 = vmatprep.mubr.msk.bf16.mxu1 %vm447_vm1, %v943_v59  ;;  %v6102_v59 = vld [vmem:[%s5674_s11 + $0x28] sm:$0xff]   ;;  %v2919_v13 = vrot.slane %v6098_v54, 2 }
  0x87   : > { %4918 = vmatmul.mubr.msk.bf16.gmra.mrb[28].mxu0 %vm447_vm1, %v2509_v10  ;;  %v2921_v10 = vrot.slane %v6102_v59, 2 }
  0x88   : > { %4921 = vmatprep.mubr.msk.bf16.mxu0 %vm447_vm1, %v2511_v22  ;;  %v984_v22 = vshrl.u32 %v6015_v35, 16  ;;  %v2920_v53 = vsel %vm2476_vm3, %v2917_v45, %v2919_v13 }
  0x89   : > { %v2922_v33 = vsel %vm2476_vm3, %v2919_v13, %v2921_v10  ;;  %v2927_v13 = vrot.slane %v6145_v26, 2 }
  0x8a   : > { %v986_v35 = vor.u32 %v984_v22, %v982_v28 }
  0x8d   : > { %4758 = vmatmul.mubr.msk.bf16.gmra.mrb[20].mxu1 %vm447_vm1, %v951_v32  ;;  %v978_v32 = vor.u32 %v976_v5, %v974_v1  ;;  %v998_v1 = vrot.slane %v996_v49, 1  ;;  %v2929_v5 = vrot.slane %v6149_v55, 2 }
  0x8e   : > { %4761 = vmatprep.mubr.msk.bf16.mxu1 %vm447_vm1, %v959_v47  ;;  %v990_v47 = vrot.slane %v988_v37, 1  ;;  %v6165_v37 = vld [vmem:[%s5674_s11 + $0x58] sm:$0xff]  }
  0x8f   : > { %4922 = vmatmul.mubr.msk.bf16.gmra.mrb[32].mxu0 %vm447_vm1, %v2513_v11  ;;  %v983_v45 = vsel %vm851_vm4, %v978_v32, %v982_v28  ;;  %v2925_v11 = vrot.slane %v6124_v40, 2  ;;  %v2930_v22 = vsel %vm2476_vm3, %v2927_v13, %v2929_v5  ;;  %v1808_v32 = vsel %vm502_vm0, %v5909_v63, 0  ;;  %v5479_v63 = vld [vmem:[%s6654_s1 + $0x8] sm:$0x3] }
  0x90   : > { %4927 = vmatprep.mubr.msk.bf16.mxu0 %vm447_vm1, %v2918_v50  ;;  %v991_v56 = vsel %vm851_vm4, %v986_v35, %v990_v47  ;;  %v2924_v50 = vsel %vm2476_vm3, %v2921_v10, %v2923_v25  ;;  %v994_v27 = vor.u32 %v992_v4, %v990_v47  ;;  %v6183_v35 = vld [vmem:[%s5674_s11 + $0x68] sm:$0xff]   ;;  %v6203_v4 = vld [vmem:[%s5674_s11 + $0x78] sm:$0xff]  }
  0x91   : > { %v2926_v36 = vsel %vm2476_vm3, %v2923_v25, %v2925_v11  ;;  %v2928_v10 = vsel %vm2476_vm3, %v2925_v11, %v2927_v13  ;;  %v6199_v25 = vld [vmem:[%s5674_s11 + $0x70] sm:$0xff]   ;;  %v6215_v11 = vld [vmem:[%s5674_s11 + $0x80] sm:$0xff]  }
  0x92   : > { %v2939_v49 = vrot.slane %v6199_v25, 2 }
  0x95   : > { %4762 = vmatmul.mubr.msk.bf16.gmra.mrb[24].mxu1 %vm447_vm1, %v967_v2  ;;  %v999_v2 = vsel %vm851_vm4, %v994_v27, %v998_v1  ;;  %v2943_v27 = vrot.slane %v6215_v11, 2 }
  0x96   : > { %4765 = vmatprep.mubr.msk.bf16.mxu1 %vm447_vm1, %v975_v43  ;;  %v6161_v43 = vld [vmem:[%s5674_s11 + $0x50] sm:$0xff]  }
  0x97   : > { %4928 = vmatmul.mubr.msk.bf16.vlgmr.msra.gmra.mrb[0].mxu0 %vm447_vm1, %v2920_v53  ;;  %v2931_v28 = vrot.slane %v6161_v43, 2  ;;  %v2933_v53 = vrot.slane %v6165_v37, 2 }
  0x98   : > { %4964 = vmatpush3.bf16.msra.mxu0 %v3455_v61  ;;  %4931 = vmatprep.mubr.msk.bf16.mxu0 %vm447_vm1, %v2922_v33  ;;  %v6179_v61 = vld [vmem:[%s5674_s11 + $0x60] sm:$0xff]  }
  0x99   : > { %5338 = vmatprep.subr.msk.bf16.mxu0 %vm502_vm0, %v6129_v48  ;;  %v2934_v33 = vsel %vm2476_vm3, %v2931_v28, %v2933_v53 }
  0x9d   : > { %4766 = vmatmul.mubr.msk.bf16.gmra.mrb[28].mxu1 %vm447_vm1, %v983_v45 }
  0x9e   : > { %4769 = vmatprep.mubr.msk.bf16.mxu1 %vm447_vm1, %v991_v56 }
  0x9f   : > { %4932 = vmatmul.mubr.msk.bf16.gmra.mrb[4].mxu0 %vm447_vm1, %v2924_v50  ;;  %v6219_v50 = vld [vmem:[%s5674_s11 + $0x88] sm:$0xff]  }
  0xa0   : > { %4935 = vmatprep.mubr.msk.bf16.mxu0 %vm447_vm1, %v2926_v36  ;;  %v2945_v1 = vrot.slane %v6219_v50, 2  ;;  %v6234_v36 = vld [vmem:[%s5674_s11 + $0x98] sm:$0xff]  }
  0xa2   : > { %v2946_v13 = vsel %vm2476_vm3, %v2943_v27, %v2945_v1 }
  0xa5   : > { %4770 = vmatmul.mubr.msk.bf16.gmra.mrb[32].mxu1 %vm447_vm1, %v999_v2 }
  0xa6   : > { %4775 = vmatprep.mubr.msk.bf16.mxu1 %vm447_vm1, %v5913_v0  ;;  %v2932_v0 = vsel %vm2476_vm3, %v2929_v5, %v2931_v28  ;;  %v3231_v5 = vshrl.u32 %v6077_v21, 16 }
  0xa7   : > { %4936 = vmatmul.mubr.msk.bf16.gmra.mrb[8].mxu0 %vm447_vm1, %v2928_v10  ;;  %v3234_v10 = vshll.u32 %v6077_v21, 16 }
  0xa8   : > { %4939 = vmatprep.mubr.msk.bf16.mxu0 %vm447_vm1, %v2930_v22  ;;  %v3242_v22 = vshll.u32 %v6081_v23, 16 }
  0xad   : > { %4776 = vmatmul.mubr.msk.bf16.vlgmr.msra.gmra.mrb[0].mxu1 %vm447_vm1, %v5897_v19  ;;  %v2935_v19 = vrot.slane %v6179_v61, 2 }
  0xae   : > { %4779 = vmatprep.mubr.msk.bf16.mxu1 %vm447_vm1, %v5904_v62  ;;  %4812 = vmatpush3.bf16.msra.mxu1 %v1808_v32  ;;  %v2937_v62 = vrot.slane %v6183_v35, 2  ;;  %v5475_v32 = vld [vmem:[%s5674_s11 + $0xa0] ss:$0 sps:$4 sm:$0x33]  }
  0xaf   : > { %5334 = vmatprep.subr.msk.bf16.mxu1 %vm502_vm0, %v5479_v63  ;;  %4940 = vmatmul.mubr.msk.bf16.gmra.mrb[12].mxu0 %vm447_vm1, %v2932_v0  ;;  %v2936_v47 = vsel %vm2476_vm3, %v2933_v53, %v2935_v19  ;;  %v3233_v0 = vrot.slane %v3231_v5, 2  ;;  %v2951_v21 = vrot.slane %v5475_v32, 2 }
  0xb0   : > { %4943 = vmatprep.mubr.msk.bf16.mxu0 %vm447_vm1, %v2934_v33  ;;  %v2938_v45 = vsel %vm2476_vm3, %v2935_v19, %v2937_v62  ;;  %v3236_v33 = vrot.slane %v3234_v10, 3  ;;  %v3244_v19 = vrot.slane %v3242_v22, 3 }
  0xb5   : > { %4780 = vmatmul.mubr.msk.bf16.gmra.mrb[4].mxu1 %vm447_vm1, %v5929_v15  ;;  %v2941_v15 = vrot.slane %v6203_v4, 2 }
  0xb6   : > { %4783 = vmatprep.mubr.msk.bf16.mxu1 %vm447_vm1, %v5932_v16  ;;  %v2940_v16 = vsel %vm2476_vm3, %v2937_v62, %v2939_v49  ;;  %v3248_v62 = vshrl.u32 %v6098_v54, 16 }
  0xb7   : > { %4944 = vmatmul.mubr.msk.bf16.gmra.mrb[16].mxu0 %vm447_vm1, %v2936_v47  ;;  %v2942_v56 = vsel %vm2476_vm3, %v2939_v49, %v2941_v15  ;;  %v3237_v47 = vor.u32 %v3236_v33, %v3233_v0  ;;  %v3257_v49 = vshrl.u32 %v6102_v59, 16  ;;  %v3284_v33 = vshrl.u32 %v6145_v26, 16 }
  0xb8   : > { %4947 = vmatprep.mubr.msk.bf16.mxu0 %vm447_vm1, %v2938_v45 }
  0xbd   : > { %4784 = vmatmul.mubr.msk.bf16.gmra.mrb[8].mxu1 %vm447_vm1, %v5939_v18  ;;  %v2944_v18 = vsel %vm2476_vm3, %v2941_v15, %v2943_v27 }
  0xbe   : > { %4787 = vmatprep.mubr.msk.bf16.mxu1 %vm447_vm1, %v5949_v30  ;;  %v6231_v30 = vld [vmem:[%s5674_s11 + $0x90] sm:$0xff]  }
  0xbf   : > { %4948 = vmatmul.mubr.msk.bf16.gmra.mrb[20].mxu0 %vm447_vm1, %v2940_v16  ;;  %v2947_v2 = vrot.slane %v6231_v30, 2  ;;  %v3250_v16 = vrot.slane %v3248_v62, 2  ;;  %v3286_v62 = vrot.slane %v3284_v33, 2 }
  0xc0   : > { %4951 = vmatprep.mubr.msk.bf16.mxu0 %vm447_vm1, %v2942_v56 }
  0xc1   : > { %v2948_v28 = vsel %vm2476_vm3, %v2945_v1, %v2947_v2  ;;  %v3259_v1 = vrot.slane %v3257_v49, 2 }
  0xc5   : > { %4788 = vmatmul.mubr.msk.bf16.gmra.mrb[12].mxu1 %vm447_vm1, %v5956_v31  ;;  %v2949_v31 = vrot.slane %v6234_v36, 2 }
  0xc6   : > { %4791 = vmatprep.mubr.msk.bf16.mxu1 %vm447_vm1, %v5966_v38  ;;  %v3239_v38 = vshrl.u32 %v6081_v23, 16 }
  0xc7   : > { %4952 = vmatmul.mubr.msk.bf16.gmra.mrb[24].mxu0 %vm447_vm1, %v2944_v18  ;;  %v2950_v53 = vsel %vm2476_vm3, %v2947_v2, %v2949_v31  ;;  %v2952_v15 = vsel %vm2476_vm3, %v2949_v31, %v2951_v21  ;;  %v3266_v2 = vshrl.u32 %v6118_v20, 16  ;;  %v3275_v31 = vshrl.u32 %v6124_v40, 16 }
  0xc8   : > { %4955 = vmatprep.mubr.msk.bf16.mxu0 %vm447_vm1, %v2946_v13  ;;  %v3241_v63 = vrot.slane %v3239_v38, 2 }
  0xc9   : > { %v3268_v38 = vrot.slane %v3266_v2, 2  ;;  %v3277_v32 = vrot.slane %v3275_v31, 2 }
  0xca   : > { %v3245_v45 = vor.u32 %v3244_v19, %v3241_v63  ;;  %v3293_v19 = vshrl.u32 %v6149_v55, 16 }
  0xcc   : > { %v3246_v27 = vsel %vm3229_vm6, %v3237_v47, %v3245_v45  ;;  %v1716_v47 = vrot.slane %v5691_v12, 1  ;;  %v3295_v49 = vrot.slane %v3293_v19, 2 }
  0xcd   : > { %4792 = vmatmul.mubr.msk.bf16.gmra.mrb[16].mxu1 %vm447_vm1, %v5972_v42  ;;  %v3251_v42 = vshll.u32 %v6098_v54, 16 }
  0xce   : > { %4795 = vmatprep.mubr.msk.bf16.mxu1 %vm447_vm1, %v5982_v7  ;;  %v3260_v7 = vshll.u32 %v6102_v59, 16 }
  0xcf   : > { %4956 = vmatmul.mubr.msk.bf16.gmra.mrb[28].mxu0 %vm447_vm1, %v2948_v28  ;;  %v3253_v56 = vrot.slane %v3251_v42, 3  ;;  %v3769_v28 = vsel %vm502_vm0, %v6129_v48, 0  ;;  %v3296_v48 = vshll.u32 %v6149_v55, 16 }
  0xd0   : > { %4959 = vmatprep.mubr.msk.bf16.mxu0 %vm447_vm1, %v2950_v53  ;;  %v3262_v18 = vrot.slane %v3260_v7, 3 }
  0xd1   : > { %v3254_v13 = vor.u32 %v3253_v56, %v3250_v16  ;;  %v3298_v7 = vrot.slane %v3296_v48, 3  ;;  %v3302_v56 = vshrl.u32 %v6161_v43, 16 }
  0xd2   : > { %v3263_v5 = vor.u32 %v3262_v18, %v3259_v1  ;;  %v3311_v1 = vshrl.u32 %v6165_v37, 16  ;;  %v3314_v18 = vshll.u32 %v6165_v37, 16 }
  0xd3   : > { %v3255_v10 = vsel %vm3229_vm6, %v3245_v45, %v3254_v13  ;;  %v3304_v2 = vrot.slane %v3302_v56, 2  ;;  %v3338_v56 = vshrl.u32 %v6199_v25, 16 }
  0xd4   : > { %v3264_v53 = vsel %vm3229_vm6, %v3254_v13, %v3263_v5 }
  0xd5   : > { %4796 = vmatmul.mubr.msk.bf16.gmra.mrb[20].mxu1 %vm447_vm1, %v5989_v51  ;;  %v3269_v51 = vshll.u32 %v6118_v20, 16 }
  0xd6   : > { %4799 = vmatprep.mubr.msk.bf16.mxu1 %vm447_vm1, %v6005_v44  ;;  %v3278_v44 = vshll.u32 %v6124_v40, 16 }
  0xd7   : > { %4960 = vmatmul.mubr.msk.bf16.gmra.mrb[32].mxu0 %vm447_vm1, %v2952_v15  ;;  %v3271_v22 = vrot.slane %v3269_v51, 3  ;;  %v5480_v15 = vld [vmem:[%s5674_s11 + $0x10] sm:$0xff]  }
  0xd8   : > { %4965 = vmatprep.mubr.msk.bf16.mxu0 %vm447_vm1, %v3246_v27  ;;  %v3280_v0 = vrot.slane %v3278_v44, 3  ;;  %v1717_v16 = vrot.slane %v5480_v15, 1  ;;  %v3299_v27 = vor.u32 %v3298_v7, %v3295_v49  ;;  %v5484_v7 = vld [vmem:[%s5674_s11 + $0x30] sm:$0xff]  }
  0xd9   : > { %v1725_v15 = vrot.slane %v5484_v7, 1 }
  0xda   : > { %v3281_v63 = vor.u32 %v3280_v0, %v3277_v32  ;;  %v1718_v12 = vsel %vm1276_vm5, %v1716_v47, %v1717_v16  ;;  %v3320_v32 = vshrl.u32 %v6179_v61, 16  ;;  %v3323_v0 = vshll.u32 %v6179_v61, 16 }
  0xdc   : > { %v3322_v48 = vrot.slane %v3320_v32, 2  ;;  %v3359_v32 = vshll.u32 %v6215_v11, 16 }
  0xdd   : > { %4800 = vmatmul.mubr.msk.bf16.gmra.mrb[24].mxu1 %vm447_vm1, %v6018_v14  ;;  %v3272_v14 = vor.u32 %v3271_v22, %v3268_v38  ;;  %v3316_v38 = vrot.slane %v3314_v18, 3  ;;  %v5482_v22 = vld [vmem:[%s5674_s11 + $0x20] sm:$0xff]  }
  0xde   : > { %4803 = vmatprep.mubr.msk.bf16.mxu1 %vm447_vm1, %v6029_v17  ;;  %v3287_v17 = vshll.u32 %v6145_v26, 16 }
  0xdf   : > { %4966 = vmatmul.mubr.msk.bf16.vlgmr.msra.gmra.mrb[0].mxu0 %vm447_vm1, %v3255_v10  ;;  %v3273_v21 = vsel %vm3229_vm6, %v3263_v5, %v3272_v14  ;;  %v3282_v45 = vsel %vm3229_vm6, %v3272_v14, %v3281_v63  ;;  %v5481_v5 = vld [vmem:[%s5674_s11 + $0x18] sm:$0xff]   ;;  %v3313_v10 = vrot.slane %v3311_v1, 2  ;;  %v3350_v1 = vshll.u32 %v6203_v4, 16 }
  0xe0   : > { %5002 = vmatpush3.bf16.msra.mxu0 %v3769_v28  ;;  %4969 = vmatprep.mubr.msk.bf16.mxu0 %vm447_vm1, %v3264_v53  ;;  %v3289_v42 = vrot.slane %v3287_v17, 3  ;;  %v1719_v31 = vrot.slane %v5481_v5, 1  ;;  %v1721_v28 = vrot.slane %v5482_v22, 1  ;;  %v3329_v17 = vshrl.u32 %v6183_v35, 16 }
  0xe1   : > { %v3317_v14 = vor.u32 %v3316_v38, %v3313_v10  ;;  %v3352_v10 = vrot.slane %v3350_v1, 3  ;;  %v5486_v38 = vld [vmem:[%s5674_s11 + $0x40] sm:$0xff]  }
  0xe2   : > { %v1720_v53 = vsel %vm1276_vm5, %v1717_v16, %v1719_v31  ;;  %v1722_v33 = vsel %vm1276_vm5, %v1719_v31, %v1721_v28  ;;  %v1729_v22 = vrot.slane %v5486_v38, 1  ;;  %v1737_v38 = vrot.slane %v5878_v41, 1 }
  0xe5   : > { %4804 = vmatmul.mubr.msk.bf16.gmra.mrb[28].mxu1 %vm447_vm1, %v6045_v39  ;;  %v3290_v39 = vor.u32 %v3289_v42, %v3286_v62  ;;  %v5483_v62 = vld [vmem:[%s5674_s11 + $0x28] sm:$0xff]  }
  0xe6   : > { %4807 = vmatprep.mubr.msk.bf16.mxu1 %vm447_vm1, %v6050_v34  ;;  %v3305_v34 = vshll.u32 %v6161_v43, 16  ;;  %v1723_v42 = vrot.slane %v5483_v62, 1 }
  0xe7   : > { %4970 = vmatmul.mubr.msk.bf16.gmra.mrb[4].mxu0 %vm447_vm1, %v3273_v21  ;;  %v3291_v13 = vsel %vm3229_vm6, %v3281_v63, %v3290_v39  ;;  %v3300_v44 = vsel %vm3229_vm6, %v3290_v39, %v3299_v27  ;;  %v3332_v63 = vshll.u32 %v6183_v35, 16  ;;  %v3325_v21 = vrot.slane %v3323_v0, 3 }
  0xe8   : > { %4973 = vmatprep.mubr.msk.bf16.mxu0 %vm447_vm1, %v3282_v45  ;;  %v3307_v51 = vrot.slane %v3305_v34, 3  ;;  %v3331_v45 = vrot.slane %v3329_v17, 2  ;;  %v1724_v39 = vsel %vm1276_vm5, %v1721_v28, %v1723_v42  ;;  %v3341_v34 = vshll.u32 %v6199_v25, 16 }
  0xe9   : > { %v3334_v49 = vrot.slane %v3332_v63, 3  ;;  %v3326_v16 = vor.u32 %v3325_v21, %v3322_v48  ;;  %v3368_v17 = vshll.u32 %v6219_v50, 16  ;;  %v3361_v48 = vrot.slane %v3359_v32, 3  ;;  %v5487_v21 = vld [vmem:[%s5674_s11 + $0x48] sm:$0xff]  }
  0xea   : > { %v1731_v62 = vrot.slane %v5487_v21, 1 }
  0xeb   : > { %v3327_v18 = vsel %vm3229_vm6, %v3317_v14, %v3326_v16 }
  0xed   : > { %4808 = vmatmul.mubr.msk.bf16.gmra.mrb[32].mxu1 %vm447_vm1, %v6061_v57  ;;  %v3308_v57 = vor.u32 %v3307_v51, %v3304_v2  ;;  %v3343_v2 = vrot.slane %v3341_v34, 3  ;;  %v5485_v51 = vld [vmem:[%s5674_s11 + $0x38] sm:$0xff]  }
  0xee   : > { %4813 = vmatprep.mubr.msk.bf16.mxu1 %vm447_vm1, %v1718_v12  ;;  %v3347_v12 = vshrl.u32 %v6203_v4, 16  ;;  %v1727_v5 = vrot.slane %v5485_v51, 1 }
  0xef   : > { %4974 = vmatmul.mubr.msk.bf16.gmra.mrb[8].mxu0 %vm447_vm1, %v3291_v13  ;;  %v3309_v19 = vsel %vm3229_vm6, %v3299_v27, %v3308_v57  ;;  %v3318_v47 = vsel %vm3229_vm6, %v3308_v57, %v3317_v14  ;;  %v1726_v27 = vsel %vm1276_vm5, %v1723_v42, %v1725_v15  ;;  %v3340_v13 = vrot.slane %v3338_v56, 2 }
  0xf0   : > { %4977 = vmatprep.mubr.msk.bf16.mxu0 %vm447_vm1, %v3300_v44  ;;  %v3349_v44 = vrot.slane %v3347_v12, 2  ;;  %v1728_v57 = vsel %vm1276_vm5, %v1725_v15, %v1727_v5  ;;  %v1730_v14 = vsel %vm1276_vm5, %v1727_v5, %v1729_v22  ;;  %v3377_v56 = vshll.u32 %v6231_v30, 16  ;;  %v6362_v5 = vld [vmem:[%s5674_s11 + $0xa0] ss:$0 sps:$4 sm:$0x77]  }
  0xf1   : > { %v3344_v28 = vor.u32 %v3343_v2, %v3340_v13  ;;  %v3386_v12 = vshll.u32 %v6234_v36, 16  ;;  %v5489_v2 = vld [vmem:[%s5674_s11 + $0x58] sm:$0xff]  }
  0xf2   : > { %v3353_v0 = vor.u32 %v3352_v10, %v3349_v44  ;;  %v3379_v13 = vrot.slane %v3377_v56, 3  ;;  %v1735_v51 = vrot.slane %v5489_v2, 1 }
  0xf3   : > { %v3388_v10 = vrot.slane %v3386_v12, 3  ;;  %v1747_v12 = vrot.slane %v6034_v29, 1 }
  0xf4   : > { %v3354_v42 = vsel %vm3229_vm6, %v3344_v28, %v3353_v0 }
  0xf5   : > { %4814 = vmatmul.mubr.msk.bf16.vlgmr.msra.gmra.mrb[0].mxu1 %vm447_vm1, %v1720_v53  ;;  %v3356_v53 = vshrl.u32 %v6215_v11, 16 }
  0xf6   : > { %4817 = vmatprep.mubr.msk.bf16.mxu1 %vm447_vm1, %v1722_v33  ;;  %5040 = vmatpush3.bf16.msra.mxu1 %v5660_v3  ;;  %v3335_v3 = vor.u32 %v3334_v49, %v3331_v45  ;;  %v3365_v33 = vshrl.u32 %v6219_v50, 16  ;;  %v3370_v45 = vrot.slane %v3368_v17, 3  ;;  %v5488_v49 = vld [vmem:[%s5674_s11 + $0x50] sm:$0xff]  }
  0xf7   : > { %4978 = vmatmul.mubr.msk.bf16.gmra.mrb[12].mxu0 %vm447_vm1, %v3309_v19  ;;  %v3358_v19 = vrot.slane %v3356_v53, 2  ;;  %v1733_v7 = vrot.slane %v5488_v49, 1  ;;  %v3395_v53 = vshll.u32 %v6362_v5, 16  ;;  %v3678_v49 = vrot.slane %v6081_v23, 3 }
  0xf8   : > { %4981 = vmatprep.mubr.msk.bf16.mxu0 %vm447_vm1, %v3318_v47  ;;  %v3336_v31 = vsel %vm3229_vm6, %v3326_v16, %v3335_v3  ;;  %v3345_v63 = vsel %vm3229_vm6, %v3335_v3, %v3344_v28  ;;  %v3367_v47 = vrot.slane %v3365_v33, 2  ;;  %v1732_v16 = vsel %vm1276_vm5, %v1729_v22, %v1731_v62 }
  0xf9   : > { %v3362_v15 = vor.u32 %v3361_v48, %v3358_v19  ;;  %v1734_v3 = vsel %vm1276_vm5, %v1731_v62, %v1733_v7  ;;  %v1736_v28 = vsel %vm1276_vm5, %v1733_v7, %v1735_v51  ;;  %v1739_v19 = vrot.slane %v5921_v6, 1 }
  0xfa   : > { %v3371_v34 = vor.u32 %v3370_v45, %v3367_v47  ;;  %v1741_v62 = vrot.slane %v5924_v8, 1  ;;  %v3680_v23 = vrot.slane %v6098_v54, 3  ;;  %v2129_v54 = vshrl.u32 %v5878_v41, 16 }
  0xfb   : > { %v3363_v1 = vsel %vm3229_vm6, %v3353_v0, %v3362_v15  ;;  %v1738_v0 = vsel %vm1276_vm5, %v1735_v51, %v1737_v38  ;;  %v1740_v47 = vsel %vm1276_vm5, %v1737_v38, %v1739_v19  ;;  %v5478_v51 = vld [vmem:[%s5674_s11 + $0x98] ss:$0 sps:$4 sm:$0x11]  }
  0xfc   : > { %v1742_v7 = vsel %vm1276_vm5, %v1739_v19, %v1741_v62 }
  0xfd   : > { %4818 = vmatmul.mubr.msk.bf16.gmra.mrb[4].mxu1 %vm447_vm1, %v1724_v39  ;;  %v3374_v39 = vshrl.u32 %v6231_v30, 16 }
  0xfe   : > { %4821 = vmatprep.mubr.msk.bf16.mxu1 %vm447_vm1, %v1726_v27  ;;  %v3383_v27 = vshrl.u32 %v6234_v36, 16 }
  0xff   : > { %4982 = vmatmul.mubr.msk.bf16.gmra.mrb[16].mxu0 %vm447_vm1, %v3327_v18  ;;  %v3376_v18 = vrot.slane %v3374_v39, 2  ;;  %v1745_v39 = vrot.slane %v5999_v58, 1 }
 0x100   : > { %4985 = vmatprep.mubr.msk.bf16.mxu0 %vm447_vm1, %v3336_v31  ;;  %v3372_v31 = vsel %vm3229_vm6, %v3362_v15, %v3371_v34  ;;  %v3385_v44 = vrot.slane %v3383_v27, 2  ;;  %v3681_v27 = vsel %vm3676_vm7, %v3678_v49, %v3680_v23 }
 0x101   : > { %v3380_v22 = vor.u32 %v3379_v13, %v3376_v18  ;;  %v1749_v18 = vrot.slane %v6039_v24, 1  ;;  %v2132_v13 = vshll.u32 %v5878_v41, 16  ;;  %v1748_v2 = vsel %vm1276_vm5, %v1745_v39, %v1747_v12 }
 0x102   : > { %v3389_v32 = vor.u32 %v3388_v10, %v3385_v44  ;;  %v2131_v10 = vrot.slane %v2129_v54, 1  ;;  %v1751_v41 = vrot.slane %v5478_v51, 1 }
 0x103   : > { %v3381_v33 = vsel %vm3229_vm6, %v3371_v34, %v3380_v22  ;;  %v3682_v34 = vrot.slane %v6102_v59, 3  ;;  %v3684_v59 = vrot.slane %v6118_v20, 3  ;;  %v1750_v44 = vsel %vm1276_vm5, %v1747_v12, %v1749_v18 }
 0x104   : > { %v3390_v48 = vsel %vm3229_vm6, %v3380_v22, %v3389_v32  ;;  %v2134_v38 = vrot.slane %v2132_v13, 2  ;;  %v2141_v20 = vshll.u32 %v5921_v6, 16  ;;  %v3696_v12 = vrot.slane %v6179_v61, 3 }
 0x105   : > { %4822 = vmatmul.mubr.msk.bf16.gmra.mrb[8].mxu1 %vm447_vm1, %v1728_v57  ;;  %v3392_v57 = vshrl.u32 %v6362_v5, 16  ;;  %v3685_v22 = vsel %vm3676_vm7, %v3682_v34, %v3684_v59  ;;  %v3698_v13 = vrot.slane %v6183_v35, 3  ;;  %v2195_v61 = vshll.u32 %v6074_v60, 16 }
 0x106   : > { %4825 = vmatprep.mubr.msk.bf16.mxu1 %vm447_vm1, %v1730_v14  ;;  %v3670_v14 = vld [vmem:[%s5674_s11 + $0x10] sm:$0x8]  ;;  %v3700_v35 = vrot.slane %v6199_v25, 3  ;;  %v3704_v25 = vrot.slane %v6215_v11, 3  ;;  %s6516_s11 = scalar_lea.vmem [#allocation3], %s5339_s8 }
 0x107   : > { %4986 = vmatmul.mubr.msk.bf16.gmra.mrb[20].mxu0 %vm447_vm1, %v3345_v63  ;;  %v3394_v17 = vrot.slane %v3392_v57, 2  ;;  %v3397_v63 = vrot.slane %v3395_v53, 3  ;;  %v4503_v21 = vcombine.low %v3670_v14, %v6066_v52  ;;  %v1743_v52 = vrot.slane %v5986_v9, 1  ;;  %s4153_s19 = sshll.u32 %s6516_s11, 4  ;;  %s6599_s19 = int_to_ptr.vmem [resolvable:$true] %s4153_s19 }
 0x108   : > { %4989 = vmatprep.mubr.msk.bf16.mxu0 %vm447_vm1, %v3354_v42  ;;  %v2135_v53 = vor.u32 %v2134_v38, %v2131_v10  ;;  %v1752_v14 = vsel %vm1276_vm5, %v1749_v18, %v1751_v41  ;;  %v2197_v41 = vrot.slane %v2195_v61, 2  ;;  %s5490_s27 = scalar_lea.vmem %s6599_s19, 4608  ;;  %p5497_p1 = scmp.lt.s32.totalorder %s6599_s19, %s5495_s29 }
 0x109   : > { %v3398_v42 = vor.u32 %v3397_v63, %v3394_v17  ;;  %v3677_v45 = vrot.slane %v4503_v21, 3  ;;  %v1744_v56 = vsel %vm1276_vm5, %v1741_v62, %v1743_v52  ;;  %v2143_v17 = vrot.slane %v2141_v20, 2  ;;  %p5491_p12 = scmp.ne.s32.totalorder %s6599_s19, %s5490_s27  ;;  %p5498_p2 = scmp.lt.s32.totalorder %s5496_s30, %s5490_s27 }
 0x10a   : > { %v3690_v63 = vrot.slane %v6149_v55, 3  ;;  %v2159_v62 = vshll.u32 %v5986_v9, 16  ;;  %v2165_v55 = vshrl.u32 %v5999_v58, 16 }
 0x10b   : > { %v3399_v15 = vsel %vm3229_vm6, %v3389_v32, %v3398_v42  ;;  %v2150_v32 = vshll.u32 %v5924_v8, 16  ;;  %p5492_p13 = pnand %p5491_p12, %p5633_p4  ;;  %p5499_p3 = por %p5498_p2, %p5497_p1 }
 0x10d   : > { %4826 = vmatmul.mubr.msk.bf16.gmra.mrb[12].mxu1 %vm447_vm1, %v1732_v16  ;;  %v3679_v16 = vsel %vm3676_vm7, %v3677_v45, %v3678_v49  ;;  %v3692_v45 = vrot.slane %v6161_v43, 3  ;;  %v2177_v43 = vshll.u32 %v6034_v29, 16  ;;  %p5493_p0 = pneg %p5492_p13 }
 0x10e   : > { %4829 = vmatprep.mubr.msk.bf16.mxu1 %vm447_vm1, %v1734_v3  ;;  %v1746_v3 = vsel %vm1276_vm5, %v1743_v52, %v1745_v39  ;;  %v3694_v52 = vrot.slane %v6165_v37, 3  ;;  %v2183_v37 = vshrl.u32 %v6039_v24, 16 }
 0x10f   : > { %4990 = vmatmul.mubr.msk.bf16.gmra.mrb[24].mxu0 %vm447_vm1, %v3363_v1  ;;  %v3683_v1 = vsel %vm3676_vm7, %v3680_v23, %v3682_v34  ;;  %v2179_v54 = vrot.slane %v2177_v43, 2  ;;  %p5500_p5 = pnand %p5499_p3, %p5493_p0 }
 0x110   : > { %4993 = vmatprep.mubr.msk.bf16.mxu0 %vm447_vm1, %v3372_v31  ;;  %v3686_v31 = vrot.slane %v6124_v40, 3  ;;  %v2147_v40 = vshrl.u32 %v5924_v8, 16  ;;  %v3695_v34 = vsel %vm3676_vm7, %v3692_v45, %v3694_v52 }
 0x112   : > { %v3687_v57 = vsel %vm3676_vm7, %v3684_v59, %v3686_v31  ;;  %v2149_v19 = vrot.slane %v2147_v40, 1  ;;  %v2185_v59 = vrot.slane %v2183_v37, 1 }
 0x115   : > { %4830 = vmatmul.mubr.msk.bf16.gmra.mrb[16].mxu1 %vm447_vm1, %v1736_v28  ;;  %v2138_v28 = vshrl.u32 %v5921_v6, 16  ;;  %v2136_v6 = vsel %vm2029_vm2, %v5794_v46, %v2135_v53  ;;  %v2168_v46 = vshll.u32 %v5999_v58, 16  ;;  %v3693_v58 = vsel %vm3676_vm7, %v3690_v63, %v3692_v45 }
 0x116   : > { %4833 = vmatprep.mubr.msk.bf16.mxu1 %vm447_vm1, %v1738_v0  ;;  %v3688_v0 = vrot.slane %v6145_v26, 3  ;;  %v2156_v26 = vshrl.u32 %v5986_v9, 16 }
 0x117   : > { %4994 = vmatmul.mubr.msk.bf16.gmra.mrb[28].mxu0 %vm447_vm1, %v3381_v33  ;;  %v2140_v33 = vrot.slane %v2138_v28, 1  ;;  %v2170_v39 = vrot.slane %v2168_v46, 2  ;;  %v3702_v28 = vrot.slane %v6203_v4, 3  ;;  %v3706_v4 = vrot.slane %v6219_v50, 3 }
 0x118   : > { %4997 = vmatprep.mubr.msk.bf16.mxu0 %vm447_vm1, %v3390_v48  ;;  %v2152_v48 = vrot.slane %v2150_v32, 2  ;;  %v3689_v8 = vsel %vm3676_vm7, %v3686_v31, %v3688_v0  ;;  %v3691_v42 = vsel %vm3676_vm7, %v3688_v0, %v3690_v63  ;;  %v2192_v31 = vshrl.u32 %v6074_v60, 16 }
 0x119   : > { %v2144_v21 = vor.u32 %v2143_v17, %v2140_v33  ;;  %v3701_v60 = vsel %vm3676_vm7, %v3698_v13, %v3700_v35  ;;  %v3705_v32 = vsel %vm3676_vm7, %v3702_v28, %v3704_v25  ;;  %v3707_v0 = vsel %vm3676_vm7, %v3704_v25, %v3706_v4 }
 0x11a   : > { %v3710_v33 = vrot.slane %v6234_v36, 3  ;;  %v3712_v50 = vrot.slane %v6362_v5, 3 }
 0x11b   : > { %v2145_v49 = vsel %vm2029_vm2, %v2135_v53, %v2144_v21  ;;  %v3703_v53 = vsel %vm3676_vm7, %v3700_v35, %v3702_v28 }
 0x11c   : > { %v3713_v63 = vsel %vm3676_vm7, %v3710_v33, %v3712_v50 }
 0x11d   : > { %4834 = vmatmul.mubr.msk.bf16.gmra.mrb[20].mxu1 %vm447_vm1, %v1740_v47  ;;  %v2153_v47 = vor.u32 %v2152_v48, %v2149_v19 }
 0x11e   : > { %4837 = vmatprep.mubr.msk.bf16.mxu1 %vm447_vm1, %v1742_v7  ;;  %v2158_v7 = vrot.slane %v2156_v26, 1 }
 0x11f   : > { %4998 = vmatmul.mubr.msk.bf16.gmra.mrb[32].mxu0 %vm447_vm1, %v3399_v15  ;;  %v2161_v15 = vrot.slane %v2159_v62, 2  ;;  %v2154_v9 = vsel %vm2029_vm2, %v2144_v21, %v2153_v47 }
 0x120   : > { %5003 = vmatprep.mubr.msk.bf16.mxu0 %vm447_vm1, %v3679_v16  ;;  %v2167_v16 = vrot.slane %v2165_v55, 1 }
 0x121   : > { %v2162_v23 = vor.u32 %v2161_v15, %v2158_v7 }
 0x125   : > { %4838 = vmatmul.mubr.msk.bf16.gmra.mrb[24].mxu1 %vm447_vm1, %v1744_v56  ;;  %v2174_v56 = vshrl.u32 %v6034_v29, 16 }
 0x126   : > { %4841 = vmatprep.mubr.msk.bf16.mxu1 %vm447_vm1, %v1746_v3  ;;  %v2171_v3 = vor.u32 %v2170_v39, %v2167_v16  ;;  %v6512_v39 = vld [vmem:[%s6655_s2] ss:$0 sm:$0xff] }
 0x127   : > { %5004 = vmatmul.mubr.msk.bf16.vlgmr.msra.gmra.mrb[0].mxu0 %vm447_vm1, %v3681_v27  ;;  %v2186_v27 = vshll.u32 %v6039_v24, 16  ;;  %v2176_v18 = vrot.slane %v2174_v56, 1  ;;  %v3697_v24 = vsel %vm3676_vm7, %v3694_v52, %v3696_v12 }
 0x128   : > { %5007 = vmatprep.mubr.msk.bf16.mxu0 %vm447_vm1, %v3683_v1  ;;  %v2163_v1 = vsel %vm2029_vm2, %v2153_v47, %v2162_v23  ;;  %v2172_v29 = vsel %vm2029_vm2, %v2162_v23, %v2171_v3 }
 0x129   : > { %v2180_v51 = vor.u32 %v2179_v54, %v2176_v18 }
 0x12b   : > { %v2181_v38 = vsel %vm2029_vm2, %v2171_v3, %v2180_v51 }
 0x12d   : > { %4842 = vmatmul.mubr.msk.bf16.gmra.mrb[28].mxu1 %vm447_vm1, %v1748_v2  ;;  %v2188_v2 = vrot.slane %v2186_v27, 2 }
 0x12e   : > { %4845 = vmatprep.mubr.msk.bf16.mxu1 %vm447_vm1, %v1750_v44  ;;  %v3699_v44 = vsel %vm3676_vm7, %v3696_v12, %v3698_v13 }
 0x12f   : > { %5008 = vmatmul.mubr.msk.bf16.gmra.mrb[4].mxu0 %vm447_vm1, %v3685_v22  ;;  %v2189_v10 = vor.u32 %v2188_v2, %v2185_v59  ;;  %v2194_v22 = vrot.slane %v2192_v31, 1 }
 0x130   : > { %5011 = vmatprep.mubr.msk.bf16.mxu0 %vm447_vm1, %v3687_v57 }
 0x131   : > { %v2190_v20 = vsel %vm2029_vm2, %v2180_v51, %v2189_v10  ;;  %v2198_v57 = vor.u32 %v2197_v41, %v2194_v22 }
 0x133   : > { %v2199_v40 = vsel %vm2029_vm2, %v2189_v10, %v2198_v57 }
 0x135   : > { %4846 = vmatmul.mubr.msk.bf16.gmra.mrb[32].mxu1 %vm447_vm1, %v1752_v14  ;;  %v3708_v14 = vrot.slane %v6231_v30, 3 }
 0x136   : > { %4871 = vmatprep.mubr.msk.bf16.mxu1 %vm447_vm1, %v2136_v6 }
 0x137   : > { %5012 = vmatmul.mubr.msk.bf16.gmra.mrb[8].mxu0 %vm447_vm1, %v3689_v8  ;;  %v3709_v11 = vsel %vm3676_vm7, %v3706_v4, %v3708_v14  ;;  %v3711_v17 = vsel %vm3676_vm7, %v3708_v14, %v3710_v33 }
 0x138   : > { %5015 = vmatprep.mubr.msk.bf16.mxu0 %vm447_vm1, %v3691_v42 }
 0x13d   : > { %4872 = vmatmul.mubr.msk.bf16.vlgmr.msra.gmra.mrb[20].mxu1 %vm447_vm1, %v2145_v49 }
 0x13e   : > { %4875 = vmatprep.mubr.msk.bf16.mxu1 %vm447_vm1, %v2154_v9 }
 0x13f   : > { %5016 = vmatmul.mubr.msk.bf16.gmra.mrb[12].mxu0 %vm447_vm1, %v3693_v58 }
 0x140   : > { %5019 = vmatprep.mubr.msk.bf16.mxu0 %vm447_vm1, %v3695_v34 }
 0x145   : > { %4876 = vmatmul.mubr.msk.bf16.gmra.mrb[24].mxu1 %vm447_vm1, %v2163_v1 }
 0x146   : > { %4879 = vmatprep.mubr.msk.bf16.mxu1 %vm447_vm1, %v2172_v29 }
 0x147   : > { %5020 = vmatmul.mubr.msk.bf16.gmra.mrb[16].mxu0 %vm447_vm1, %v3697_v24 }
 0x148   : > { %5023 = vmatprep.mubr.msk.bf16.mxu0 %vm447_vm1, %v3699_v44 }
 0x14d   : > { %4880 = vmatmul.mubr.msk.bf16.gmra.mrb[28].mxu1 %vm447_vm1, %v2181_v38 }
 0x14e   : > { %4883 = vmatprep.mubr.msk.bf16.mxu1 %vm447_vm1, %v2190_v20 }
 0x14f   : > { %5024 = vmatmul.mubr.msk.bf16.gmra.mrb[20].mxu0 %vm447_vm1, %v3701_v60 }
 0x150   : > { %5027 = vmatprep.mubr.msk.bf16.mxu0 %vm447_vm1, %v3703_v53 }
 0x155   : > { %4884 = vmatmul.mubr.msk.bf16.gmra.mrb[32].mxu1 %vm447_vm1, %v2199_v40 }
 0x157   : > { %5028 = vmatmul.mubr.msk.bf16.gmra.mrb[24].mxu0 %vm447_vm1, %v3705_v32 }
 0x158   : > { %5031 = vmatprep.mubr.msk.bf16.mxu0 %vm447_vm1, %v3707_v0 }
 0x15f   : > { %5032 = vmatmul.mubr.msk.bf16.gmra.mrb[28].mxu0 %vm447_vm1, %v3709_v11 }
 0x160   : > { %5035 = vmatprep.mubr.msk.bf16.mxu0 %vm447_vm1, %v3711_v17 }
 0x167   : > { %5036 = vmatmul.mubr.msk.bf16.gmra.mrb[32].mxu0 %vm447_vm1, %v3713_v63 }
 0x1c8   : > { %v4815_v6 = vpop.f32.mrb[0].mxu1 }
 0x1c9   : > { %v1844_v19 = vpop.f32.mrb[1].mxu1 }
 0x1ca   : > { %v4816_v48 = vpop.f32.mrb[2].mxu1 }
 0x1cb   : > { %v1847_v30 = vpop.f32.mrb[3].mxu1 }
 0x1d0   : > { %v4819_v8 = vpop.f32.mrb[4].mxu1 }
 0x1d1   : > { %v1860_v36 = vpop.f32.mrb[5].mxu1 }
 0x1d2   : > { %v4820_v21 = vpop.f32.mrb[6].mxu1 }
 0x1d3   : > { %v1863_v26 = vpop.f32.mrb[7].mxu1 }
 0x1d8   : > { %v4823_v62 = vpop.f32.mrb[8].mxu1 }
 0x1d9   : > { %v1876_v42 = vpop.f32.mrb[9].mxu1 }
 0x1da   : > { %v4824_v47 = vpop.f32.mrb[10].mxu1 }
 0x1db   : > { %v1879_v55 = vpop.f32.mrb[11].mxu1 }
 0x1e0   : > { %v6490_v46 = vpop.f32.mrb[12].mxu1 }
 0x1e1   : > { %v6492_v5 = vpop.f32.mrb[13].mxu1 }
 0x1e2   : > { %v6494_v45 = vpop.f32.mrb[14].mxu1 }
 0x1e3   : > { %v6496_v49 = vpop.f32.mrb[15].mxu1 }
 0x1e8   : > { %v6498_v7 = vpop.f32.mrb[16].mxu1 }
 0x1e9   : > { %v6500_v15 = vpop.f32.mrb[17].mxu1 }
 0x1ea   : > { %v6502_v52 = vpop.f32.mrb[18].mxu1 }
 0x1eb   : > { %v6504_v9 = vpop.f32.mrb[19].mxu1 }
 0x1fa   : > { %v5005_v16 = vpop.f32.mrb[0].mxu0 }
 0x1fb   : > { %v5041_v58 = vadd.f32 %v5005_v16, %v4815_v6  ;;  %v3805_v23 = vpop.f32.mrb[1].mxu0 }
 0x1fc   : > { %v5042_v56 = vadd.f32 %v3805_v23, %v1844_v19  ;;  %v5006_v43 = vpop.f32.mrb[2].mxu0 }
 0x1fd   : > { %v4068_v34 = vadd.f32 %v5041_v58, %v6512_v39  ;;  %v5043_v3 = vadd.f32 %v5006_v43, %v4816_v48  ;;  %v3808_v37 = vpop.f32.mrb[3].mxu0 }
 0x1fe   : > { %v4066_v27 = vadd.f32 %v5042_v56, %v6512_v39  ;;  %v5044_v12 = vadd.f32 %v3808_v37, %v1847_v30 }
 0x1ff   : > { %4104 = vst [vmem:[%s6516_s11 + $0x10] sm:$0xff] %v4068_v34  ;;  %v4069_v1 = vadd.f32 %v5043_v3, %v6512_v39 }
 0x200   : > { %4102 = vst [vmem:[%s6516_s11] sm:$0xff] %v4066_v27  ;;  %v4067_v18 = vadd.f32 %v5044_v12, %v6512_v39 }
 0x201   : > { %4105 = vst [vmem:[%s6516_s11 + $0x18] sm:$0xff] %v4069_v1 }
 0x202   : > { %4103 = vst [vmem:[%s6516_s11 + $0x8] sm:$0xff] %v4067_v18  ;;  %v5009_v54 = vpop.f32.mrb[4].mxu0 }
 0x203   : > { %v5045_v13 = vadd.f32 %v5009_v54, %v4819_v8  ;;  %v3821_v29 = vpop.f32.mrb[5].mxu0 }
 0x204   : > { %v5046_v59 = vadd.f32 %v3821_v29, %v1860_v36  ;;  %v5010_v2 = vpop.f32.mrb[6].mxu0 }
 0x205   : > { %v4072_v24 = vadd.f32 %v5045_v13, %v6512_v39  ;;  %v5047_v51 = vadd.f32 %v5010_v2, %v4820_v21  ;;  %v3824_v31 = vpop.f32.mrb[7].mxu0 }
 0x206   : > { %v4070_v61 = vadd.f32 %v5046_v59, %v6512_v39  ;;  %v5048_v44 = vadd.f32 %v3824_v31, %v1863_v26 }
 0x207   : > { %4108 = vst [vmem:[%s6516_s11 + $0x30] sm:$0xff] %v4072_v24  ;;  %v4073_v10 = vadd.f32 %v5047_v51, %v6512_v39 }
 0x208   : > { %4106 = vst [vmem:[%s6516_s11 + $0x20] sm:$0xff] %v4070_v61  ;;  %v4071_v35 = vadd.f32 %v5048_v44, %v6512_v39 }
 0x209   : > { %4109 = vst [vmem:[%s6516_s11 + $0x38] sm:$0xff] %v4073_v10 }
 0x20a   : > { %4107 = vst [vmem:[%s6516_s11 + $0x28] sm:$0xff] %v4071_v35  ;;  %v5013_v38 = vpop.f32.mrb[8].mxu0 }
 0x20b   : > { %v5049_v22 = vadd.f32 %v5013_v38, %v4823_v62  ;;  %v3837_v41 = vpop.f32.mrb[9].mxu0 }
 0x20c   : > { %v5050_v28 = vadd.f32 %v3837_v41, %v1876_v42  ;;  %v5014_v20 = vpop.f32.mrb[10].mxu0 }
 0x20d   : > { %v4076_v60 = vadd.f32 %v5049_v22, %v6512_v39  ;;  %v5051_v57 = vadd.f32 %v5014_v20, %v4824_v47  ;;  %v3840_v53 = vpop.f32.mrb[11].mxu0 }
 0x20e   : > { %v4074_v25 = vadd.f32 %v5050_v28, %v6512_v39  ;;  %v5052_v40 = vadd.f32 %v3840_v53, %v1879_v55 }
 0x20f   : > { %4112 = vst [vmem:[%s6516_s11 + $0x50] sm:$0xff] %v4076_v60  ;;  %v4077_v32 = vadd.f32 %v5051_v57, %v6512_v39 }
 0x210   : > { %v4873_v4 = vpop.f32.mrb[20].mxu1  ;;  %4110 = vst [vmem:[%s6516_s11 + $0x40] sm:$0xff] %v4074_v25  ;;  %v4075_v14 = vadd.f32 %v5052_v40, %v6512_v39 }
 0x211   : > { %v2371_v0 = vpop.f32.mrb[21].mxu1  ;;  %4113 = vst [vmem:[%s6516_s11 + $0x58] sm:$0xff] %v4077_v32 }
 0x212   : > { %v4874_v33 = vpop.f32.mrb[22].mxu1  ;;  %4111 = vst [vmem:[%s6516_s11 + $0x48] sm:$0xff] %v4075_v14  ;;  %v5017_v17 = vpop.f32.mrb[12].mxu0 }
 0x213   : > { %v2374_v11 = vpop.f32.mrb[23].mxu1  ;;  %v5053_v50 = vadd.f32 %v5017_v17, %v6490_v46  ;;  %v3853_v63 = vpop.f32.mrb[13].mxu0 }
 0x214   : > { %v5054_v6 = vadd.f32 %v3853_v63, %v6492_v5  ;;  %v5018_v19 = vpop.f32.mrb[14].mxu0 }
 0x215   : > { %v4080_v48 = vadd.f32 %v5053_v50, %v6512_v39  ;;  %v5055_v30 = vadd.f32 %v5018_v19, %v6494_v45  ;;  %v3856_v8 = vpop.f32.mrb[15].mxu0 }
 0x216   : > { %v4078_v36 = vadd.f32 %v5054_v6, %v6512_v39  ;;  %v5056_v21 = vadd.f32 %v3856_v8, %v6496_v49 }
 0x217   : > { %4116 = vst [vmem:[%s6516_s11 + $0x70] sm:$0xff] %v4080_v48  ;;  %v4081_v62 = vadd.f32 %v5055_v30, %v6512_v39 }
 0x218   : > { %v4877_v26 = vpop.f32.mrb[24].mxu1  ;;  %4114 = vst [vmem:[%s6516_s11 + $0x60] sm:$0xff] %v4078_v36  ;;  %v4079_v47 = vadd.f32 %v5056_v21, %v6512_v39 }
 0x219   : > { %v2387_v42 = vpop.f32.mrb[25].mxu1  ;;  %4117 = vst [vmem:[%s6516_s11 + $0x78] sm:$0xff] %v4081_v62 }
 0x21a   : > { %v4878_v55 = vpop.f32.mrb[26].mxu1  ;;  %4115 = vst [vmem:[%s6516_s11 + $0x68] sm:$0xff] %v4079_v47  ;;  %v5021_v5 = vpop.f32.mrb[16].mxu0 }
 0x21b   : > { %v2390_v46 = vpop.f32.mrb[27].mxu1  ;;  %v5057_v45 = vadd.f32 %v5021_v5, %v6498_v7  ;;  %v3869_v16 = vpop.f32.mrb[17].mxu0 }
 0x21c   : > { %v5058_v49 = vadd.f32 %v3869_v16, %v6500_v15  ;;  %v5022_v58 = vpop.f32.mrb[18].mxu0 }
 0x21d   : > { %v4084_v23 = vadd.f32 %v5057_v45, %v6512_v39  ;;  %v5059_v56 = vadd.f32 %v5022_v58, %v6502_v52  ;;  %v3872_v43 = vpop.f32.mrb[19].mxu0 }
 0x21e   : > { %v4082_v34 = vadd.f32 %v5058_v49, %v6512_v39  ;;  %v5060_v3 = vadd.f32 %v3872_v43, %v6504_v9 }
 0x21f   : > { %4120 = vst [vmem:[%s6516_s11 + $0x90] sm:$0xff] %v4084_v23  ;;  %v4085_v27 = vadd.f32 %v5059_v56, %v6512_v39 }
 0x220   : > { %v4881_v37 = vpop.f32.mrb[28].mxu1  ;;  %4118 = vst [vmem:[%s6516_s11 + $0x80] sm:$0xff] %v4082_v34  ;;  %v4083_v12 = vadd.f32 %v5060_v3, %v6512_v39 }
 0x221   : > { %v2403_v7 = vpop.f32.mrb[29].mxu1  ;;  %4121 = vst [vmem:[%s6516_s11 + $0x98] sm:$0xff] %v4085_v27 }
 0x222   : > { %v4882_v15 = vpop.f32.mrb[30].mxu1  ;;  %4119 = vst [vmem:[%s6516_s11 + $0x88] sm:$0xff] %v4083_v12  ;;  %v5025_v52 = vpop.f32.mrb[20].mxu0 }
 0x223   : > { %v2406_v1 = vpop.f32.mrb[31].mxu1  ;;  %v5061_v18 = vadd.f32 %v5025_v52, %v4873_v4  ;;  %v3885_v54 = vpop.f32.mrb[21].mxu0 }
 0x224   : > { %v5062_v13 = vadd.f32 %v3885_v54, %v2371_v0  ;;  %v5026_v9 = vpop.f32.mrb[22].mxu0 }
 0x225   : > { %v4088_v29 = vadd.f32 %v5061_v18, %v6512_v39  ;;  %v5063_v59 = vadd.f32 %v5026_v9, %v4874_v33  ;;  %v3888_v2 = vpop.f32.mrb[23].mxu0 }
 0x226   : > { %v4086_v24 = vadd.f32 %v5062_v13, %v6512_v39  ;;  %v5064_v51 = vadd.f32 %v3888_v2, %v2374_v11 }
 0x227   : > { %4124 = vst [vmem:[%s6516_s11 + $0xb0] sm:$0xff] %v4088_v29  ;;  %v4089_v61 = vadd.f32 %v5063_v59, %v6512_v39 }
 0x228   : > { %v4885_v31 = vpop.f32.mrb[32].mxu1  ;;  %4122 = vst [vmem:[%s6516_s11 + $0xa0] sm:$0xff] %v4086_v24  ;;  %v4087_v10 = vadd.f32 %v5064_v51, %v6512_v39 }
 0x229   : > { %v2419_v44 = vpop.f32.mrb[33].mxu1  ;;  %4125 = vst [vmem:[%s6516_s11 + $0xb8] sm:$0xff] %v4089_v61 }
 0x22a   : > { %v4886_v35 = vpop.f32.mrb[34].mxu1  ;;  %4123 = vst [vmem:[%s6516_s11 + $0xa8] sm:$0xff] %v4087_v10  ;;  %v5029_v22 = vpop.f32.mrb[24].mxu0 }
 0x22b   : > { %v2422_v38 = vpop.f32.mrb[35].mxu1  ;;  %v5065_v41 = vadd.f32 %v5029_v22, %v4877_v26  ;;  %v3901_v28 = vpop.f32.mrb[25].mxu0 }
 0x22c   : > { %v5066_v20 = vadd.f32 %v3901_v28, %v2387_v42  ;;  %v5030_v60 = vpop.f32.mrb[26].mxu0 }
 0x22d   : > { %v4092_v57 = vadd.f32 %v5065_v41, %v6512_v39  ;;  %v5067_v53 = vadd.f32 %v5030_v60, %v4878_v55  ;;  %v3904_v25 = vpop.f32.mrb[27].mxu0 }
 0x22e   : > { %v4090_v40 = vadd.f32 %v5066_v20, %v6512_v39  ;;  %v5068_v4 = vadd.f32 %v3904_v25, %v2390_v46 }
 0x22f   : > { %4128 = vst [vmem:[%s6516_s11 + $0xd0] sm:$0xff] %v4092_v57  ;;  %v4093_v32 = vadd.f32 %v5067_v53, %v6512_v39 }
 0x230   : > { %4126 = vst [vmem:[%s6516_s11 + $0xc0] sm:$0xff] %v4090_v40  ;;  %v4091_v0 = vadd.f32 %v5068_v4, %v6512_v39 }
 0x231   : > { %4129 = vst [vmem:[%s6516_s11 + $0xd8] sm:$0xff] %v4093_v32 }
 0x232   : > { %4127 = vst [vmem:[%s6516_s11 + $0xc8] sm:$0xff] %v4091_v0  ;;  %v5033_v14 = vpop.f32.mrb[28].mxu0 }
 0x233   : > { %v5069_v33 = vadd.f32 %v5033_v14, %v4881_v37  ;;  %v3917_v11 = vpop.f32.mrb[29].mxu0 }
 0x234   : > { %v5070_v17 = vadd.f32 %v3917_v11, %v2403_v7  ;;  %v5034_v50 = vpop.f32.mrb[30].mxu0 }
 0x235   : > { %v4096_v63 = vadd.f32 %v5069_v33, %v6512_v39  ;;  %v5071_v6 = vadd.f32 %v5034_v50, %v4882_v15  ;;  %v3920_v19 = vpop.f32.mrb[31].mxu0 }
 0x236   : > { %v4094_v48 = vadd.f32 %v5070_v17, %v6512_v39  ;;  %v5072_v30 = vadd.f32 %v3920_v19, %v2406_v1 }
 0x237   : > { %4132 = vst [vmem:[%s6516_s11 + $0xf0] sm:$0xff] %v4096_v63  ;;  %v4097_v8 = vadd.f32 %v5071_v6, %v6512_v39 }
 0x238   : > { %4130 = vst [vmem:[%s6516_s11 + $0xe0] sm:$0xff] %v4094_v48  ;;  %v4095_v36 = vadd.f32 %v5072_v30, %v6512_v39 }
 0x239   : > { %4133 = vst [vmem:[%s6516_s11 + $0xf8] sm:$0xff] %v4097_v8 }
 0x23a   : > { %4131 = vst [vmem:[%s6516_s11 + $0xe8] sm:$0xff] %v4095_v36  ;;  %v5037_v21 = vpop.f32.mrb[32].mxu0 }
 0x23b   : > { %v5073_v26 = vadd.f32 %v5037_v21, %v4885_v31  ;;  %v3933_v62 = vpop.f32.mrb[33].mxu0 }
 0x23c   : > { %v5074_v42 = vadd.f32 %v3933_v62, %v2419_v44  ;;  %v5038_v47 = vpop.f32.mrb[34].mxu0 }
 0x23d   : > { %v4100_v55 = vadd.f32 %v5073_v26, %v6512_v39  ;;  %v5075_v46 = vadd.f32 %v5038_v47, %v4886_v35  ;;  %v3936_v5 = vpop.f32.mrb[35].mxu0 }
 0x23e   : > { %v4098_v45 = vadd.f32 %v5074_v42, %v6512_v39  ;;  %v5076_v16 = vadd.f32 %v3936_v5, %v2422_v38 }
 0x23f   : > { %4136 = vst [vmem:[%s6516_s11 + $0x110] sm:$0xff] %v4100_v55  ;;  %v4101_v49 = vadd.f32 %v5075_v46, %v6512_v39 }
 0x240   : > { %4134 = vst [vmem:[%s6516_s11 + $0x100] sm:$0xff] %v4098_v45  ;;  %v4099_v58 = vadd.f32 %v5076_v16, %v6512_v39 }
 0x241   : > { %4137 = vst [vmem:[%s6516_s11 + $0x118] sm:$0xff] %v4101_v49 }
 0x242   : > { %4135 = vst [vmem:[%s6516_s11 + $0x108] sm:$0xff] %v4099_v58 }
 0x243   : > { %5503 = shalt.err (!%p5500_p5)
}
 0x244   : > { %s5504_s4 = scalar_lea.hbm %s6597_s15, 4608  ;;  %s5508_s7 = scalar_lea.hbm %s6656_s3, 9216 }
 0x245   : > { %p5505_p6 = scmp.ne.s32.totalorder %s6597_s15, %s5504_s4  ;;  %p5509_p10 = scmp.lt.u32.totalorder %s6597_s15, %s6656_s3 }
 0x246   : > { %p5510_p11 = scmp.lt.u32.totalorder %s5508_s7, %s5504_s4  ;;  %p5512_p13 = scmp.lt.u32.totalorder %s5504_s4, %s6597_s15 }
 0x247   : > { %p5506_p7 = pnand %p5505_p6, %p5633_p4 }
 0x248   : > { %p5511_p12 = por %p5510_p11, %p5509_p10 }
 0x249   : > { %p5507_p9 = pneg %p5506_p7 }
 0x24a   : > { %p5513_p0 = por %p5512_p13, %p5511_p12 }
 0x24c   : > { %p5514_p1 = pnand %p5513_p0, %p5507_p9 }
 0x24e   : > { %5517 = shalt.err (!%p5514_p1)
}
 0x24f   : > { %s5571_s10 = smov 128   ;;  %s5572_s11 = smov 8  }
 0x250   : > { %5342 = dma.vmem_to_hbm [thread:$0]  (%p5633_p4), %s6599_s19, 4608, %s6597_s15, %s6607_s26, %s5571_s10, %s5571_s10, %s5572_s11  }
 0x251 PF: > { %p5348_p2 = scmp.ge.s32.totalorder %s5568_s17, 2  ;;  %s4168_s18 = sand.u32 1, %s5548_s12  }
 0x252   : > { %s4169_s21 = scalar_lea.sflag [#allocation4], %s4168_s18 }
 0x253   : > { %p5345_p3 = pnand %p5348_p2, %p5640_p8 }
 0x255   : > { %5543 = dma.done.wait (!%p5345_p3), %s4169_s21, 4608  }
 0x256   : > { %5545 = vsyncadd (!%p5345_p3), %s4169_s21, 4294962688  ;;  %s16_s17 = sadd.s32 1, %s5568_s17   ;;  %s6659_s12 = smov %s5552_s13 }
 0x257   : > { %p13_p5 = scmp.ge.s32.totalorder %s16_s17, 4   ;;  %s6660_s13 = smov %s5556_s14 }
 0x258   : > { %s6661_s14 = smov %s5646_s25  ;;  %s6662_s15 = smov %s5564_s16 }
 0x259   : > { %s6663_s16 = smov %s6665_s20  ;;  %15 = sbr.rel (!%p13_p5) target bundleno = 4 (0x4), region = 89 }
 0x260   :  { %4174 = vsyncpa [#allocation4], 1 }
 0x261   :  { %4176 = vsyncpa [#allocation4 + $0x1], 1 }

</bundles_post_ra>
